<compile_context>
chip_gen: v5e
topology: v5e:2x2
jax: 0.10.0
libtpu: 0.0.40
codegen_flags: <defaults>
</compile_context>

<pallas_src>
import functools

import jax
import jax.numpy as jnp
from jax.experimental import pallas as pl
from jax.experimental.pallas import tpu as pltpu

BN_EPS = 1e-5
LANE = 128          # feature dims padded to a multiple of the lane width
SUBLANE_BF16 = 16   # bf16 sublane pack -> batch tile padded to a multiple of this


def _round_up(v, m):
    return (v + m - 1) // m * m


def _cdiv(a, b):
    return -(-a // b)


def _pick_vmem_limit():
    """Per-generation scoped-VMEM limit (~3/4 of physical, capped)."""
    cap = None
    try:
        cap = getattr(pltpu.get_tpu_info(), "vmem_capacity_bytes", None)
    except Exception:
        cap = None
    if not cap:
        cap = 64 * 1024 * 1024          # conservative fallback = v7x physical VMEM
    return int(min(cap * 3 // 4, 110 * 1024 * 1024))


def _auto_tile_n(n, cin_p, cout_p, vmem_limit):
    """Pick the batch tile from a VMEM budget over the heaviest pass."""
    budget = int(vmem_limit * 0.6)
    # double-buffered bf16 weight resident (largest of pass-1 fused / square weights)
    w_bytes = 2 * 2 * max(cin_p * 2 * cout_p, cout_p * cout_p)
    # bytes per batch row, double-buffered streaming refs (bf16 tiles, f32 final out)
    per_row = 2 * max(2 * cin_p + 4 * cout_p,   # pass 1: x in + (h, r) out
                      8 * cout_p)               # pass 3 (4 bf16) / pass 5 (2 bf16 + f32)
    tn = max(budget - w_bytes, 0) // max(per_row, 1)
    tn = max(min(tn, 2048), SUBLANE_BF16)
    tn = min(tn, _round_up(n, SUBLANE_BF16))
    return max((tn // SUBLANE_BF16) * SUBLANE_BF16, SUBLANE_BF16)


# ---------------------------------------------------------------------------
# in-kernel helpers
# ---------------------------------------------------------------------------
def _colstats8(h):
    """(tn, C) f32 -> per-sublane-group partial column sum / sum-of-squares, (8, C)."""
    g = h.shape[0] // 8
    h3 = h.reshape(g, 8, h.shape[1])
    return jnp.sum(h3, axis=0), jnp.sum(h3 * h3, axis=0)


def _fold_bn(sum_in_ref, ssq_in_ref, g_ref, b_ref, inv_n):
    """Fold training-mode BatchNorm1d (biased var) into (1, C) scale/shift rows."""
    s = jnp.sum(jnp.sum(sum_in_ref[...], axis=0), axis=0, keepdims=True)   # (1, C)
    q = jnp.sum(jnp.sum(ssq_in_ref[...], axis=0), axis=0, keepdims=True)
    mean = s * inv_n
    var = jnp.maximum(q * inv_n - mean * mean, 0.0)      # guard fp cancellation
    scale = g_ref[...] * jax.lax.rsqrt(var + BN_EPS)     # EUP
    shift = b_ref[...] - mean * scale
    return scale, shift


# ---------------------------------------------------------------------------
# kernels
# ---------------------------------------------------------------------------
def _p1_kernel(x_ref, w_ref, h_ref, r_ref, sum_ref, ssq_ref, *, cout_p, identity_res):
    """Fused pass 1: [h | r] = x @ [W11 | Wres] (or r = x for identity residual),
    plus partial column stats of h (from the f32 MXU result)."""
    @pl.when(pl.program_id(1) == 0)
    def _():
        sum_ref[...] = jnp.zeros_like(sum_ref)
        ssq_ref[...] = jnp.zeros_like(ssq_ref)

    x = x_ref[...]
    hr = jnp.dot(x, w_ref[...], preferred_element_type=jnp.float32)
    if identity_res:
        h = hr
        r_ref[...] = x                                   # identity residual (cin == cout)
    else:
        h = hr[:, :cout_p]
        r_ref[...] = hr[:, cout_p:].astype(r_ref.dtype)
    h_ref[...] = h.astype(h_ref.dtype)

    s, q = _colstats8(h)      # padded x rows are zero -> contribute nothing
    sum_ref[...] += s[None]
    ssq_ref[...] += q[None]


def _mid_kernel(h_ref, sum_in_ref, ssq_in_ref, g_ref, b_ref, w_ref,
                hn_ref, sum_ref, ssq_ref,
                *, inv_n, n_real, tn, tiles_per_split, need_mask):
    """a = relu(BN(h)); hn = a @ W; accumulate partial stats(hn)."""
    @pl.when(pl.program_id(1) == 0)
    def _():
        sum_ref[...] = jnp.zeros_like(sum_ref)
        ssq_ref[...] = jnp.zeros_like(ssq_ref)

    scale, shift = _fold_bn(sum_in_ref, ssq_in_ref, g_ref, b_ref, inv_n)
    a = jnp.maximum(h_ref[...].astype(jnp.float32) * scale + shift, 0.0)
    if need_mask:
        # zero padded batch rows so they never pollute downstream statistics
        gt = pl.program_id(0) * tiles_per_split + pl.program_id(1)
        row = gt * tn + jax.lax.broadcasted_iota(jnp.int32, a.shape, 0)
        a = jnp.where(row < n_real, a, 0.0)

    hn = jnp.dot(a.astype(w_ref.dtype), w_ref[...], preferred_element_type=jnp.float32)
    hn_ref[...] = hn.astype(hn_ref.dtype)
    s, q = _colstats8(hn)
    sum_ref[...] += s[None]
    ssq_ref[...] += q[None]


def _mid_res_kernel(h_ref, sum_in_ref, ssq_in_ref, g_ref, b_ref, res_ref, w_ref,
                    y_ref, hn_ref, sum_ref, ssq_ref,
                    *, inv_n, n_real, tn, tiles_per_split, need_mask):
    """a = relu(BN(h)); y = a + res; hn = y @ W; accumulate partial stats(hn)."""
    @pl.when(pl.program_id(1) == 0)
    def _():
        sum_ref[...] = jnp.zeros_like(sum_ref)
        ssq_ref[...] = jnp.zeros_like(ssq_ref)

    scale, shift = _fold_bn(sum_in_ref, ssq_in_ref, g_ref, b_ref, inv_n)
    a = jnp.maximum(h_ref[...].astype(jnp.float32) * scale + shift, 0.0)
    if need_mask:
        gt = pl.program_id(0) * tiles_per_split + pl.program_id(1)
        row = gt * tn + jax.lax.broadcasted_iota(jnp.int32, a.shape, 0)
        a = jnp.where(row < n_real, a, 0.0)    # also keeps y1's padded rows zero

    y = a + res_ref[...].astype(jnp.float32)
    y_ref[...] = y.astype(y_ref.dtype)
    hn = jnp.dot(y.astype(w_ref.dtype), w_ref[...], preferred_element_type=jnp.float32)
    hn_ref[...] = hn.astype(hn_ref.dtype)
    s, q = _colstats8(hn)
    sum_ref[...] += s[None]
    ssq_ref[...] += q[None]


def _final_kernel(h_ref, sum_in_ref, ssq_in_ref, g_ref, b_ref, res_ref, y_ref, *, inv_n):
    """y = relu(BN(h)) + res (f32 output)."""
    scale, shift = _fold_bn(sum_in_ref, ssq_in_ref, g_ref, b_ref, inv_n)
    a = jnp.maximum(h_ref[...].astype(jnp.float32) * scale + shift, 0.0)
    y_ref[...] = (a + res_ref[...].astype(jnp.float32)).astype(y_ref.dtype)


# ---------------------------------------------------------------------------
# wrapper
# ---------------------------------------------------------------------------
def narrow_residual_transformation_head(x, params, *, tile_n=None):
    """x: (N, Cin) float32.  params: dict of weights (see init_params).
    params['wres'] is None  <=>  identity residual (requires Cin == Cout)."""
    n, cin = x.shape
    cout = params["w11"].shape[1]
    f32, bf16 = jnp.float32, jnp.bfloat16

    identity_res = params.get("wres", None) is None
    if identity_res and cin != cout:
        raise ValueError("identity residual requires cin == cout")

    cin_p = _round_up(cin, LANE)
    cout_p = _round_up(cout, LANE)

    vmem_limit = _pick_vmem_limit()
    if tile_n is None:
        tn = _auto_tile_n(n, cin_p, cout_p, vmem_limit)
    else:
        tn = max(SUBLANE_BF16,
                 _round_up(min(tile_n, _round_up(n, SUBLANE_BF16)), SUBLANE_BF16))

    num_tiles = _cdiv(n, tn)
    nsplit = 2 if num_tiles >= 2 else 1        # leading "parallel" axis -> v7x 2-TC split
    tiles_per_split = _cdiv(num_tiles, nsplit)
    n_p = nsplit * tiles_per_split * tn
    need_mask = (n_p != n)
    grid = (nsplit, tiles_per_split)
    inv_n = 1.0 / n

    # --- zero-pad to lane-dense / tile-aligned shapes, cast to bf16 ----------
    xp = jnp.zeros((n_p, cin_p), bf16).at[:n, :cin].set(x.astype(bf16))

    def pad_w(w, rows, cols):
        w = jnp.asarray(w, f32)
        return jnp.zeros((rows, cols), f32).at[:w.shape[0], :w.shape[1]].set(w).astype(bf16)

    def pad_row(v):
        v = jnp.asarray(v, f32).reshape(1, -1)
        return jnp.zeros((1, cout_p), f32).at[:, :v.shape[1]].set(v)

    w11 = pad_w(params["w11"], cin_p, cout_p)
    if identity_res:
        w1r = w11                                               # pass-1 RHS: W11 only
    else:
        w1r = jnp.concatenate([w11, pad_w(params["wres"], cin_p, cout_p)], axis=1)
    w12 = pad_w(params["w12"], cout_p, cout_p)
    w21 = pad_w(params["w21"], cout_p, cout_p)
    w22 = pad_w(params["w22"], cout_p, cout_p)
    g11, b11 = pad_row(params["g11"]), pad_row(params["b11"])
    g12, b12 = pad_row(params["g12"]), pad_row(params["b12"])
    g21, b21 = pad_row(params["g21"]), pad_row(params["b21"])
    g22, b22 = pad_row(params["g22"]), pad_row(params["b22"])

    # --- specs ----------------------------------------------------------------
    def tile_map(c, i):
        return (c * tiles_per_split + i, 0)

    x_spec = pl.BlockSpec((tn, cin_p), tile_map)
    t_spec = pl.BlockSpec((tn, cout_p), tile_map)

    def full_spec(a):
        nd = a.ndim
        return pl.BlockSpec(a.shape, lambda c, i: (0,) * nd)

    stat_spec = pl.BlockSpec((1, 8, cout_p), lambda c, i: (c, 0, 0))
    stat_shape = jax.ShapeDtypeStruct((nsplit, 8, cout_p), f32)
    t_bf16 = jax.ShapeDtypeStruct((n_p, cout_p), bf16)
    t_f32 = jax.ShapeDtypeStruct((n_p, cout_p), f32)

    cp_acc = pltpu.CompilerParams(dimension_semantics=("parallel", "arbitrary"),
                                  vmem_limit_bytes=vmem_limit)
    cp_par = pltpu.CompilerParams(dimension_semantics=("parallel", "parallel"),
                                  vmem_limit_bytes=vmem_limit)

    mid_kw = dict(inv_n=inv_n, n_real=n, tn=tn,
                  tiles_per_split=tiles_per_split, need_mask=need_mask)

    # ---- pass 1: [h1 | r] = x @ [W11 | Wres], partial stats(h1) ---------------
    h1, r, s1, q1 = pl.pallas_call(
        functools.partial(_p1_kernel, cout_p=cout_p, identity_res=identity_res),
        grid=grid,
        in_specs=[x_spec, full_spec(w1r)],
        out_specs=[t_spec, t_spec, stat_spec, stat_spec],
        out_shape=[t_bf16, t_bf16, stat_shape, stat_shape],
        compiler_params=cp_acc,
    )(xp, w1r)

    # ---- pass 2: a1 = relu(bn1(h1)); h2 = a1 @ W12; stats(h2) -----------------
    h2, s2, q2 = pl.pallas_call(
        functools.partial(_mid_kernel, **mid_kw),
        grid=grid,
        in_specs=[t_spec, full_spec(s1), full_spec(q1),
                  full_spec(g11), full_spec(b11), full_spec(w12)],
        out_specs=[t_spec, stat_spec, stat_spec],
        out_shape=[t_bf16, stat_shape, stat_shape],
        compiler_params=cp_acc,
    )(h1, s1, q1, g11, b11, w12)

    # ---- pass 3: a2 = relu(bn2(h2)); y1 = a2 + r; h3 = y1 @ W21; stats(h3) ----
    y1, h3, s3, q3 = pl.pallas_call(
        functools.partial(_mid_res_kernel, **mid_kw),
        grid=grid,
        in_specs=[t_spec, full_spec(s2), full_spec(q2),
                  full_spec(g12), full_spec(b12), t_spec, full_spec(w21)],
        out_specs=[t_spec, t_spec, stat_spec, stat_spec],
        out_shape=[t_bf16, t_bf16, stat_shape, stat_shape],
        compiler_params=cp_acc,
    )(h2, s2, q2, g12, b12, r, w21)

    # ---- pass 4: a3 = relu(bn3(h3)); h4 = a3 @ W22; stats(h4) -----------------
    h4, s4, q4 = pl.pallas_call(
        functools.partial(_mid_kernel, **mid_kw),
        grid=grid,
        in_specs=[t_spec, full_spec(s3), full_spec(q3),
                  full_spec(g21), full_spec(b21), full_spec(w22)],
        out_specs=[t_spec, stat_spec, stat_spec],
        out_shape=[t_bf16, stat_shape, stat_shape],
        compiler_params=cp_acc,
    )(h3, s3, q3, g21, b21, w22)

    # ---- pass 5: y2 = relu(bn4(h4)) + y1 --------------------------------------
    y2 = pl.pallas_call(
        functools.partial(_final_kernel, inv_n=inv_n),
        grid=grid,
        in_specs=[t_spec, full_spec(s4), full_spec(q4),
                  full_spec(g22), full_spec(b22), t_spec],
        out_specs=t_spec,
        out_shape=t_f32,
        compiler_params=cp_par,
    )(h4, s4, q4, g22, b22, y1)

    return y2[:n, :cout]


# ---------------------------------------------------------------------------
# parameter init + pure-JAX reference
# ---------------------------------------------------------------------------
def init_params(key, cin, cout, identity_residual=False):
    """Synthetic params. PyTorch stores nn.Linear weight as (out, in); we store
    the transpose (in, out) so kernels compute x @ W. BN gamma=1, beta=0."""
    ks = jax.random.split(key, 5)
    scale_in = 1.0 / jnp.sqrt(cin)
    scale_out = 1.0 / jnp.sqrt(cout)
    ones = jnp.ones((1, cout), jnp.float32)
    zeros = jnp.zeros((1, cout), jnp.float32)
    wres = None if identity_residual else jax.random.uniform(
        ks[0], (cin, cout), jnp.float32, -scale_in, scale_in)
    return {
        "wres": wres,
        "w11": jax.random.uniform(ks[1], (cin, cout), jnp.float32, -scale_in, scale_in),
        "g11": ones, "b11": zeros,
        "w12": jax.random.uniform(ks[2], (cout, cout), jnp.float32, -scale_out, scale_out),
        "g12": ones, "b12": zeros,
        "w21": jax.random.uniform(ks[3], (cout, cout), jnp.float32, -scale_out, scale_out),
        "g21": ones, "b21": zeros,
        "w22": jax.random.uniform(ks[4], (cout, cout), jnp.float32, -scale_out, scale_out),
        "g22": ones, "b22": zeros,
    }


def _reference(x, p):
    """Pure-JAX f32 reference of the same forward."""
    def bn_relu(h, g, b):
        mu = jnp.mean(h, axis=0, keepdims=True)
        var = jnp.mean((h - mu) ** 2, axis=0, keepdims=True)
        return jnp.maximum((h - mu) / jnp.sqrt(var + BN_EPS) * g + b, 0.0)

    r = x if p.get("wres", None) is None else x @ p["wres"]
    h = bn_relu(x @ p["w11"], p["g11"], p["b11"])
    h = bn_relu(h @ p["w12"], p["g12"], p["b12"])
    y1 = h + r
    h = bn_relu(y1 @ p["w21"], p["g21"], p["b21"])
    h = bn_relu(h @ p["w22"], p["g22"], p["b22"])
    return h + y1


if __name__ == "__main__":
    key = jax.random.PRNGKey(0)
    kx, kp, kx2, kp2 = jax.random.split(key, 4)

    # -- small test: projection residual (cin != cout), single tile -------------
    N, CIN, COUT = 8, 16, 32
    x = jax.random.normal(kx, (N, CIN), jnp.float32)
    params = init_params(kp, CIN, COUT)
    out = jax.block_until_ready(jax.jit(narrow_residual_transformation_head)(x, params))
    ref = _reference(x, params)
    assert out.shape == (N, COUT)
    assert jnp.allclose(out, ref, atol=5e-2, rtol=5e-2), "mismatch vs JAX reference (small)"

    # -- multi-tile test: identity residual, N-tiling, split grid, row masking --
    N2, C2 = 600, 160
    x2 = jax.random.normal(kx2, (N2, C2), jnp.float32)
    params2 = init_params(kp2, C2, C2, identity_residual=True)
    fwd2 = jax.jit(functools.partial(narrow_residual_transformation_head, tile_n=128))
    out2 = jax.block_until_ready(fwd2(x2, params2))
    ref2 = _reference(x2, params2)
    assert out2.shape == (N2, C2)
    assert jnp.allclose(out2, ref2, atol=5e-2, rtol=5e-2), "mismatch vs JAX reference (tiled)"

    print("KERNEL_OK")
</pallas_src>

<mosaic_0001>
module attributes {stable_mosaic.version = 11 : i64} {
  func.func @_p1_kernel(%arg0: i32, %arg1: i32, %arg2: memref<16x128xbf16, #tpu.memory_space<vmem>>, %arg3: memref<128x256xbf16, #tpu.memory_space<vmem>>, %arg4: memref<16x128xbf16, #tpu.memory_space<vmem>>, %arg5: memref<16x128xbf16, #tpu.memory_space<vmem>>, %arg6: memref<1x8x128xf32, #tpu.memory_space<vmem>>, %arg7: memref<1x8x128xf32, #tpu.memory_space<vmem>>) attributes {dimension_semantics = [#tpu.dimension_semantics<parallel>, #tpu.dimension_semantics<arbitrary>], iteration_bounds = array<i64: 1, 1>, scalar_prefetch = 0 : i64, scratch_operands = 0 : i64, tpu.core_type = #tpu.core_type<tc>, window_params = [{transform_indices = @transform_0, window_bounds = array<i64: 16, 128>}, {pipeline_mode = #tpu.pipeline_mode<synchronous>, transform_indices = @transform_1, window_bounds = array<i64: 128, 256>}, {transform_indices = @transform_2, window_bounds = array<i64: 16, 128>}, {transform_indices = @transform_3, window_bounds = array<i64: 16, 128>}, {transform_indices = @transform_4, window_bounds = array<i64: 1, 8, 128>}, {transform_indices = @transform_5, window_bounds = array<i64: 1, 8, 128>}]} {
    %c0_i32 = arith.constant 0 : i32
    %0 = arith.cmpi eq, %arg1, %c0_i32 : i32
    %1 = arith.extui %0 : i1 to i32
    %c0_i32_0 = arith.constant 0 : i32
    %2 = arith.cmpi ne, %1, %c0_i32_0 : i32
    scf.if %2 {
      %cst_22 = arith.constant 0.000000e+00 : f32
      %24 = vector.broadcast %cst_22 : f32 to vector<1x8x128xf32>
      %c0_23 = arith.constant 0 : index
      %c0_24 = arith.constant 0 : index
      %c0_25 = arith.constant 0 : index
      %25 = vector.load %arg6[%c0_23, %c0_24, %c0_25] : memref<1x8x128xf32, #tpu.memory_space<vmem>>, vector<1x8x128xf32>
      tpu.vector_store %arg6[%c0_23, %c0_24, %c0_25], %24 {strides = array<i32>} : memref<1x8x128xf32, #tpu.memory_space<vmem>>, vector<1x8x128xf32>,
      %cst_26 = arith.constant 0.000000e+00 : f32
      %26 = vector.broadcast %cst_26 : f32 to vector<1x8x128xf32>
      %c0_27 = arith.constant 0 : index
      %c0_28 = arith.constant 0 : index
      %c0_29 = arith.constant 0 : index
      %27 = vector.load %arg7[%c0_27, %c0_28, %c0_29] : memref<1x8x128xf32, #tpu.memory_space<vmem>>, vector<1x8x128xf32>
      tpu.vector_store %arg7[%c0_27, %c0_28, %c0_29], %26 {strides = array<i32>} : memref<1x8x128xf32, #tpu.memory_space<vmem>>, vector<1x8x128xf32>,
    } else {
    }
    %c0 = arith.constant 0 : index
    %c0_1 = arith.constant 0 : index
    %3 = vector.load %arg2[%c0, %c0_1] : memref<16x128xbf16, #tpu.memory_space<vmem>>, vector<16x128xbf16>
    %c0_2 = arith.constant 0 : index
    %c0_3 = arith.constant 0 : index
    %4 = vector.load %arg3[%c0_2, %c0_3] : memref<128x256xbf16, #tpu.memory_space<vmem>>, vector<128x256xbf16>
    %cst = arith.constant dense<0.000000e+00> : vector<16x256xf32>
    %5 = tpu.matmul %3, %4, %cst {dimension_numbers = #tpu.dot_dimension_numbers<[1], [0], [0], [1], [0, 0, 1, 1], [], []>} : vector<16x128xbf16>, vector<128x256xbf16>, vector<16x256xf32> -> vector<16x256xf32>
    %6 = vector.extract_strided_slice %5 {offsets = [0, 0], sizes = [16, 128], strides = [1, 1]} : vector<16x256xf32> to vector<16x128xf32>
    %7 = vector.extract_strided_slice %5 {offsets = [0, 128], sizes = [16, 128], strides = [1, 1]} : vector<16x256xf32> to vector<16x128xf32>
    %8 = arith.truncf %7 : vector<16x128xf32> to vector<16x128xbf16>
    %c0_4 = arith.constant 0 : index
    %c0_5 = arith.constant 0 : index
    %9 = vector.load %arg5[%c0_4, %c0_5] : memref<16x128xbf16, #tpu.memory_space<vmem>>, vector<16x128xbf16>
    tpu.vector_store %arg5[%c0_4, %c0_5], %8 {strides = array<i32>} : memref<16x128xbf16, #tpu.memory_space<vmem>>, vector<16x128xbf16>,
    %10 = arith.truncf %6 : vector<16x128xf32> to vector<16x128xbf16>
    %c0_6 = arith.constant 0 : index
    %c0_7 = arith.constant 0 : index
    %11 = vector.load %arg4[%c0_6, %c0_7] : memref<16x128xbf16, #tpu.memory_space<vmem>>, vector<16x128xbf16>
    tpu.vector_store %arg4[%c0_6, %c0_7], %10 {strides = array<i32>} : memref<16x128xbf16, #tpu.memory_space<vmem>>, vector<16x128xbf16>,
    %12 = vector.shape_cast %6 : vector<16x128xf32> to vector<2x8x128xf32>
    %cst_8 = arith.constant dense<0.000000e+00> : vector<8x128xf32>
    %13 = vector.multi_reduction <add>, %12, %cst_8 [0] : vector<2x8x128xf32> to vector<8x128xf32>
    %14 = arith.mulf %12, %12 : vector<2x8x128xf32>
    %cst_9 = arith.constant dense<0.000000e+00> : vector<8x128xf32>
    %15 = vector.multi_reduction <add>, %14, %cst_9 [0] : vector<2x8x128xf32> to vector<8x128xf32>
    %c0_10 = arith.constant 0 : index
    %c0_11 = arith.constant 0 : index
    %c0_12 = arith.constant 0 : index
    %16 = vector.load %arg6[%c0_10, %c0_11, %c0_12] : memref<1x8x128xf32, #tpu.memory_space<vmem>>, vector<1x8x128xf32>
    %17 = vector.shape_cast %13 : vector<8x128xf32> to vector<1x8x128xf32>
    %18 = arith.addf %16, %17 : vector<1x8x128xf32>
    %c0_13 = arith.constant 0 : index
    %c0_14 = arith.constant 0 : index
    %c0_15 = arith.constant 0 : index
    %19 = vector.load %arg6[%c0_13, %c0_14, %c0_15] : memref<1x8x128xf32, #tpu.memory_space<vmem>>, vector<1x8x128xf32>
    tpu.vector_store %arg6[%c0_13, %c0_14, %c0_15], %18 {strides = array<i32>} : memref<1x8x128xf32, #tpu.memory_space<vmem>>, vector<1x8x128xf32>,
    %c0_16 = arith.constant 0 : index
    %c0_17 = arith.constant 0 : index
    %c0_18 = arith.constant 0 : index
    %20 = vector.load %arg7[%c0_16, %c0_17, %c0_18] : memref<1x8x128xf32, #tpu.memory_space<vmem>>, vector<1x8x128xf32>
    %21 = vector.shape_cast %15 : vector<8x128xf32> to vector<1x8x128xf32>
    %22 = arith.addf %20, %21 : vector<1x8x128xf32>
    %c0_19 = arith.constant 0 : index
    %c0_20 = arith.constant 0 : index
    %c0_21 = arith.constant 0 : index
    %23 = vector.load %arg7[%c0_19, %c0_20, %c0_21] : memref<1x8x128xf32, #tpu.memory_space<vmem>>, vector<1x8x128xf32>
    tpu.vector_store %arg7[%c0_19, %c0_20, %c0_21], %22 {strides = array<i32>} : memref<1x8x128xf32, #tpu.memory_space<vmem>>, vector<1x8x128xf32>,
    return
  }
  func.func @transform_0(%arg0: i32, %arg1: i32) -> (i32, i32) {
    %c1_i32 = arith.constant 1 : i32
    %0 = arith.muli %arg0, %c1_i32 : i32
    %1 = arith.addi %0, %arg1 : i32
    %c0_i32 = arith.constant 0 : i32
    %c0_i32_0 = arith.constant 0 : i32
    return %1, %c0_i32 : i32, i32
  }
  func.func @transform_1(%arg0: i32, %arg1: i32) -> (i32, i32) {
    %c0_i32 = arith.constant 0 : i32
    %c0_i32_0 = arith.constant 0 : i32
    %c0_i32_1 = arith.constant 0 : i32
    return %c0_i32, %c0_i32_0 : i32, i32
  }
  func.func @transform_2(%arg0: i32, %arg1: i32) -> (i32, i32) {
    %c1_i32 = arith.constant 1 : i32
    %0 = arith.muli %arg0, %c1_i32 : i32
    %1 = arith.addi %0, %arg1 : i32
    %c0_i32 = arith.constant 0 : i32
    %c0_i32_0 = arith.constant 0 : i32
    return %1, %c0_i32 : i32, i32
  }
  func.func @transform_3(%arg0: i32, %arg1: i32) -> (i32, i32) {
    %c1_i32 = arith.constant 1 : i32
    %0 = arith.muli %arg0, %c1_i32 : i32
    %1 = arith.addi %0, %arg1 : i32
    %c0_i32 = arith.constant 0 : i32
    %c0_i32_0 = arith.constant 0 : i32
    return %1, %c0_i32 : i32, i32
  }
  func.func @transform_4(%arg0: i32, %arg1: i32) -> (i32, i32, i32) {
    %c0_i32 = arith.constant 0 : i32
    %c0_i32_0 = arith.constant 0 : i32
    %c0_i32_1 = arith.constant 0 : i32
    return %arg0, %c0_i32, %c0_i32_0 : i32, i32, i32
  }
  func.func @transform_5(%arg0: i32, %arg1: i32) -> (i32, i32, i32) {
    %c0_i32 = arith.constant 0 : i32
    %c0_i32_0 = arith.constant 0 : i32
    %c0_i32_1 = arith.constant 0 : i32
    return %arg0, %c0_i32, %c0_i32_0 : i32, i32, i32
  }
}

module attributes {stable_mosaic.version = 11 : i64} {
  func.func @_mid_kernel(%arg0: i32, %arg1: i32, %arg2: memref<16x128xbf16, #tpu.memory_space<vmem>>, %arg3: memref<1x8x128xf32, #tpu.memory_space<vmem>>, %arg4: memref<1x8x128xf32, #tpu.memory_space<vmem>>, %arg5: memref<1x128xf32, #tpu.memory_space<vmem>>, %arg6: memref<1x128xf32, #tpu.memory_space<vmem>>, %arg7: memref<128x128xbf16, #tpu.memory_space<vmem>>, %arg8: memref<16x128xbf16, #tpu.memory_space<vmem>>, %arg9: memref<1x8x128xf32, #tpu.memory_space<vmem>>, %arg10: memref<1x8x128xf32, #tpu.memory_space<vmem>>) attributes {dimension_semantics = [#tpu.dimension_semantics<parallel>, #tpu.dimension_semantics<arbitrary>], iteration_bounds = array<i64: 1, 1>, scalar_prefetch = 0 : i64, scratch_operands = 0 : i64, tpu.core_type = #tpu.core_type<tc>, window_params = [{transform_indices = @transform_0, window_bounds = array<i64: 16, 128>}, {pipeline_mode = #tpu.pipeline_mode<synchronous>, transform_indices = @transform_1, window_bounds = array<i64: 1, 8, 128>}, {pipeline_mode = #tpu.pipeline_mode<synchronous>, transform_indices = @transform_2, window_bounds = array<i64: 1, 8, 128>}, {pipeline_mode = #tpu.pipeline_mode<synchronous>, transform_indices = @transform_3, window_bounds = array<i64: 1, 128>}, {pipeline_mode = #tpu.pipeline_mode<synchronous>, transform_indices = @transform_4, window_bounds = array<i64: 1, 128>}, {pipeline_mode = #tpu.pipeline_mode<synchronous>, transform_indices = @transform_5, window_bounds = array<i64: 128, 128>}, {transform_indices = @transform_6, window_bounds = array<i64: 16, 128>}, {transform_indices = @transform_7, window_bounds = array<i64: 1, 8, 128>}, {transform_indices = @transform_8, window_bounds = array<i64: 1, 8, 128>}]} {
    %c0_i32 = arith.constant 0 : i32
    %0 = arith.cmpi eq, %arg1, %c0_i32 : i32
    %1 = arith.extui %0 : i1 to i32
    %c0_i32_0 = arith.constant 0 : i32
    %2 = arith.cmpi ne, %1, %c0_i32_0 : i32
    scf.if %2 {
      %cst_40 = arith.constant 0.000000e+00 : f32
      %62 = vector.broadcast %cst_40 : f32 to vector<1x8x128xf32>
      %c0_41 = arith.constant 0 : index
      %c0_42 = arith.constant 0 : index
      %c0_43 = arith.constant 0 : index
      %63 = vector.load %arg9[%c0_41, %c0_42, %c0_43] : memref<1x8x128xf32, #tpu.memory_space<vmem>>, vector<1x8x128xf32>
      tpu.vector_store %arg9[%c0_41, %c0_42, %c0_43], %62 {strides = array<i32>} : memref<1x8x128xf32, #tpu.memory_space<vmem>>, vector<1x8x128xf32>,
      %cst_44 = arith.constant 0.000000e+00 : f32
      %64 = vector.broadcast %cst_44 : f32 to vector<1x8x128xf32>
      %c0_45 = arith.constant 0 : index
      %c0_46 = arith.constant 0 : index
      %c0_47 = arith.constant 0 : index
      %65 = vector.load %arg10[%c0_45, %c0_46, %c0_47] : memref<1x8x128xf32, #tpu.memory_space<vmem>>, vector<1x8x128xf32>
      tpu.vector_store %arg10[%c0_45, %c0_46, %c0_47], %64 {strides = array<i32>} : memref<1x8x128xf32, #tpu.memory_space<vmem>>, vector<1x8x128xf32>,
    } else {
    }
    %c0 = arith.constant 0 : index
    %c0_1 = arith.constant 0 : index
    %c0_2 = arith.constant 0 : index
    %3 = vector.load %arg3[%c0, %c0_1, %c0_2] : memref<1x8x128xf32, #tpu.memory_space<vmem>>, vector<1x8x128xf32>
    %cst = arith.constant dense<0.000000e+00> : vector<8x128xf32>
    %4 = vector.multi_reduction <add>, %3, %cst [0] : vector<1x8x128xf32> to vector<8x128xf32>
    %cst_3 = arith.constant dense<0.000000e+00> : vector<128xf32>
    %5 = vector.multi_reduction <add>, %4, %cst_3 [0] : vector<8x128xf32> to vector<128xf32>
    %6 = vector.shape_cast %5 : vector<128xf32> to vector<1x128xf32>
    %c0_4 = arith.constant 0 : index
    %c0_5 = arith.constant 0 : index
    %c0_6 = arith.constant 0 : index
    %7 = vector.load %arg4[%c0_4, %c0_5, %c0_6] : memref<1x8x128xf32, #tpu.memory_space<vmem>>, vector<1x8x128xf32>
    %cst_7 = arith.constant dense<0.000000e+00> : vector<8x128xf32>
    %8 = vector.multi_reduction <add>, %7, %cst_7 [0] : vector<1x8x128xf32> to vector<8x128xf32>
    %cst_8 = arith.constant dense<0.000000e+00> : vector<128xf32>
    %9 = vector.multi_reduction <add>, %8, %cst_8 [0] : vector<8x128xf32> to vector<128xf32>
    %10 = vector.shape_cast %9 : vector<128xf32> to vector<1x128xf32>
    %cst_9 = arith.constant 1.250000e-01 : f32
    %11 = vector.broadcast %cst_9 : f32 to vector<1x128xf32>
    %12 = arith.mulf %6, %11 : vector<1x128xf32>
    %cst_10 = arith.constant 1.250000e-01 : f32
    %13 = vector.broadcast %cst_10 : f32 to vector<1x128xf32>
    %14 = arith.mulf %10, %13 : vector<1x128xf32>
    %15 = arith.mulf %12, %12 : vector<1x128xf32>
    %16 = arith.subf %14, %15 : vector<1x128xf32>
    %cst_11 = arith.constant 0.000000e+00 : f32
    %17 = vector.broadcast %cst_11 : f32 to vector<1x128xf32>
    %18 = arith.maximumf %16, %17 : vector<1x128xf32>
    %c0_12 = arith.constant 0 : index
    %c0_13 = arith.constant 0 : index
    %19 = vector.load %arg5[%c0_12, %c0_13] : memref<1x128xf32, #tpu.memory_space<vmem>>, vector<1x128xf32>
    %cst_14 = arith.constant 9.99999974E-6 : f32
    %20 = vector.broadcast %cst_14 : f32 to vector<1x128xf32>
    %21 = arith.addf %18, %20 : vector<1x128xf32>
    %22 = math.rsqrt %21 : vector<1x128xf32>
    %23 = arith.mulf %19, %22 : vector<1x128xf32>
    %c0_15 = arith.constant 0 : index
    %c0_16 = arith.constant 0 : index
    %24 = vector.load %arg6[%c0_15, %c0_16] : memref<1x128xf32, #tpu.memory_space<vmem>>, vector<1x128xf32>
    %25 = arith.mulf %12, %23 : vector<1x128xf32>
    %26 = arith.subf %24, %25 : vector<1x128xf32>
    %c0_17 = arith.constant 0 : index
    %c0_18 = arith.constant 0 : index
    %27 = vector.load %arg2[%c0_17, %c0_18] : memref<16x128xbf16, #tpu.memory_space<vmem>>, vector<16x128xbf16>
    %28 = arith.extf %27 : vector<16x128xbf16> to vector<16x128xf32>
    %29 = vector.broadcast %23 : vector<1x128xf32> to vector<16x128xf32>
    %30 = arith.mulf %28, %29 : vector<16x128xf32>
    %31 = vector.broadcast %26 : vector<1x128xf32> to vector<16x128xf32>
    %32 = arith.addf %30, %31 : vector<16x128xf32>
    %cst_19 = arith.constant 0.000000e+00 : f32
    %33 = vector.broadcast %cst_19 : f32 to vector<16x128xf32>
    %34 = arith.maximumf %32, %33 : vector<16x128xf32>
    %c1_i32 = arith.constant 1 : i32
    %35 = arith.muli %arg0, %c1_i32 : i32
    %36 = arith.addi %35, %arg1 : i32
    %c16_i32 = arith.constant 16 : i32
    %37 = arith.muli %36, %c16_i32 : i32
    %38 = tpu.iota {dimensions = array<i32: 0>} : vector<16x128xi32>
    %39 = vector.broadcast %37 : i32 to vector<16x128xi32>
    %40 = arith.addi %39, %38 : vector<16x128xi32>
    %c8_i32 = arith.constant 8 : i32
    %41 = vector.broadcast %c8_i32 : i32 to vector<16x128xi32>
    %42 = arith.cmpi slt, %40, %41 : vector<16x128xi32>
    %cst_20 = arith.constant 0.000000e+00 : f32
    %43 = vector.broadcast %cst_20 : f32 to vector<16x128xf32>
    %44 = arith.select %42, %34, %43 : vector<16x128xi1>, vector<16x128xf32>
    %45 = arith.truncf %44 : vector<16x128xf32> to vector<16x128xbf16>
    %c0_21 = arith.constant 0 : index
    %c0_22 = arith.constant 0 : index
    %46 = vector.load %arg7[%c0_21, %c0_22] : memref<128x128xbf16, #tpu.memory_space<vmem>>, vector<128x128xbf16>
    %cst_23 = arith.constant dense<0.000000e+00> : vector<16x128xf32>
    %47 = tpu.matmul %45, %46, %cst_23 {dimension_numbers = #tpu.dot_dimension_numbers<[1], [0], [0], [1], [0, 0, 1, 1], [], []>} : vector<16x128xbf16>, vector<128x128xbf16>, vector<16x128xf32> -> vector<16x128xf32>
    %48 = arith.truncf %47 : vector<16x128xf32> to vector<16x128xbf16>
    %c0_24 = arith.constant 0 : index
    %c0_25 = arith.constant 0 : index
    %49 = vector.load %arg8[%c0_24, %c0_25] : memref<16x128xbf16, #tpu.memory_space<vmem>>, vector<16x128xbf16>
    tpu.vector_store %arg8[%c0_24, %c0_25], %48 {strides = array<i32>} : memref<16x128xbf16, #tpu.memory_space<vmem>>, vector<16x128xbf16>,
    %50 = vector.shape_cast %47 : vector<16x128xf32> to vector<2x8x128xf32>
    %cst_26 = arith.constant dense<0.000000e+00> : vector<8x128xf32>
    %51 = vector.multi_reduction <add>, %50, %cst_26 [0] : vector<2x8x128xf32> to vector<8x128xf32>
    %52 = arith.mulf %50, %50 : vector<2x8x128xf32>
    %cst_27 = arith.constant dense<0.000000e+00> : vector<8x128xf32>
    %53 = vector.multi_reduction <add>, %52, %cst_27 [0] : vector<2x8x128xf32> to vector<8x128xf32>
    %c0_28 = arith.constant 0 : index
    %c0_29 = arith.constant 0 : index
    %c0_30 = arith.constant 0 : index
    %54 = vector.load %arg9[%c0_28, %c0_29, %c0_30] : memref<1x8x128xf32, #tpu.memory_space<vmem>>, vector<1x8x128xf32>
    %55 = vector.shape_cast %51 : vector<8x128xf32> to vector<1x8x128xf32>
    %56 = arith.addf %54, %55 : vector<1x8x128xf32>
    %c0_31 = arith.constant 0 : index
    %c0_32 = arith.constant 0 : index
    %c0_33 = arith.constant 0 : index
    %57 = vector.load %arg9[%c0_31, %c0_32, %c0_33] : memref<1x8x128xf32, #tpu.memory_space<vmem>>, vector<1x8x128xf32>
    tpu.vector_store %arg9[%c0_31, %c0_32, %c0_33], %56 {strides = array<i32>} : memref<1x8x128xf32, #tpu.memory_space<vmem>>, vector<1x8x128xf32>,
    %c0_34 = arith.constant 0 : index
    %c0_35 = arith.constant 0 : index
    %c0_36 = arith.constant 0 : index
    %58 = vector.load %arg10[%c0_34, %c0_35, %c0_36] : memref<1x8x128xf32, #tpu.memory_space<vmem>>, vector<1x8x128xf32>
    %59 = vector.shape_cast %53 : vector<8x128xf32> to vector<1x8x128xf32>
    %60 = arith.addf %58, %59 : vector<1x8x128xf32>
    %c0_37 = arith.constant 0 : index
    %c0_38 = arith.constant 0 : index
    %c0_39 = arith.constant 0 : index
    %61 = vector.load %arg10[%c0_37, %c0_38, %c0_39] : memref<1x8x128xf32, #tpu.memory_space<vmem>>, vector<1x8x128xf32>
    tpu.vector_store %arg10[%c0_37, %c0_38, %c0_39], %60 {strides = array<i32>} : memref<1x8x128xf32, #tpu.memory_space<vmem>>, vector<1x8x128xf32>,
    return
  }
  func.func @transform_0(%arg0: i32, %arg1: i32) -> (i32, i32) {
    %c1_i32 = arith.constant 1 : i32
    %0 = arith.muli %arg0, %c1_i32 : i32
    %1 = arith.addi %0, %arg1 : i32
    %c0_i32 = arith.constant 0 : i32
    %c0_i32_0 = arith.constant 0 : i32
    return %1, %c0_i32 : i32, i32
  }
  func.func @transform_1(%arg0: i32, %arg1: i32) -> (i32, i32, i32) {
    %c0_i32 = arith.constant 0 : i32
    %c0_i32_0 = arith.constant 0 : i32
    %c0_i32_1 = arith.constant 0 : i32
    %c0_i32_2 = arith.constant 0 : i32
    return %c0_i32, %c0_i32_0, %c0_i32_1 : i32, i32, i32
  }
  func.func @transform_2(%arg0: i32, %arg1: i32) -> (i32, i32, i32) {
    %c0_i32 = arith.constant 0 : i32
    %c0_i32_0 = arith.constant 0 : i32
    %c0_i32_1 = arith.constant 0 : i32
    %c0_i32_2 = arith.constant 0 : i32
    return %c0_i32, %c0_i32_0, %c0_i32_1 : i32, i32, i32
  }
  func.func @transform_3(%arg0: i32, %arg1: i32) -> (i32, i32) {
    %c0_i32 = arith.constant 0 : i32
    %c0_i32_0 = arith.constant 0 : i32
    %c0_i32_1 = arith.constant 0 : i32
    return %c0_i32, %c0_i32_0 : i32, i32
  }
  func.func @transform_4(%arg0: i32, %arg1: i32) -> (i32, i32) {
    %c0_i32 = arith.constant 0 : i32
    %c0_i32_0 = arith.constant 0 : i32
    %c0_i32_1 = arith.constant 0 : i32
    return %c0_i32, %c0_i32_0 : i32, i32
  }
  func.func @transform_5(%arg0: i32, %arg1: i32) -> (i32, i32) {
    %c0_i32 = arith.constant 0 : i32
    %c0_i32_0 = arith.constant 0 : i32
    %c0_i32_1 = arith.constant 0 : i32
    return %c0_i32, %c0_i32_0 : i32, i32
  }
  func.func @transform_6(%arg0: i32, %arg1: i32) -> (i32, i32) {
    %c1_i32 = arith.constant 1 : i32
    %0 = arith.muli %arg0, %c1_i32 : i32
    %1 = arith.addi %0, %arg1 : i32
    %c0_i32 = arith.constant 0 : i32
    %c0_i32_0 = arith.constant 0 : i32
    return %1, %c0_i32 : i32, i32
  }
  func.func @transform_7(%arg0: i32, %arg1: i32) -> (i32, i32, i32) {
    %c0_i32 = arith.constant 0 : i32
    %c0_i32_0 = arith.constant 0 : i32
    %c0_i32_1 = arith.constant 0 : i32
    return %arg0, %c0_i32, %c0_i32_0 : i32, i32, i32
  }
  func.func @transform_8(%arg0: i32, %arg1: i32) -> (i32, i32, i32) {
    %c0_i32 = arith.constant 0 : i32
    %c0_i32_0 = arith.constant 0 : i32
    %c0_i32_1 = arith.constant 0 : i32
    return %arg0, %c0_i32, %c0_i32_0 : i32, i32, i32
  }
}

module attributes {stable_mosaic.version = 11 : i64} {
  func.func @_final_kernel(%arg0: i32, %arg1: i32, %arg2: memref<16x128xbf16, #tpu.memory_space<vmem>>, %arg3: memref<1x8x128xf32, #tpu.memory_space<vmem>>, %arg4: memref<1x8x128xf32, #tpu.memory_space<vmem>>, %arg5: memref<1x128xf32, #tpu.memory_space<vmem>>, %arg6: memref<1x128xf32, #tpu.memory_space<vmem>>, %arg7: memref<16x128xbf16, #tpu.memory_space<vmem>>, %arg8: memref<16x128xf32, #tpu.memory_space<vmem>>) attributes {dimension_semantics = [#tpu.dimension_semantics<parallel>, #tpu.dimension_semantics<parallel>], iteration_bounds = array<i64: 1, 1>, scalar_prefetch = 0 : i64, scratch_operands = 0 : i64, tpu.core_type = #tpu.core_type<tc>, window_params = [{transform_indices = @transform_0, window_bounds = array<i64: 16, 128>}, {pipeline_mode = #tpu.pipeline_mode<synchronous>, transform_indices = @transform_1, window_bounds = array<i64: 1, 8, 128>}, {pipeline_mode = #tpu.pipeline_mode<synchronous>, transform_indices = @transform_2, window_bounds = array<i64: 1, 8, 128>}, {pipeline_mode = #tpu.pipeline_mode<synchronous>, transform_indices = @transform_3, window_bounds = array<i64: 1, 128>}, {pipeline_mode = #tpu.pipeline_mode<synchronous>, transform_indices = @transform_4, window_bounds = array<i64: 1, 128>}, {transform_indices = @transform_5, window_bounds = array<i64: 16, 128>}, {transform_indices = @transform_6, window_bounds = array<i64: 16, 128>}]} {
    %c0 = arith.constant 0 : index
    %c0_0 = arith.constant 0 : index
    %c0_1 = arith.constant 0 : index
    %0 = vector.load %arg3[%c0, %c0_0, %c0_1] : memref<1x8x128xf32, #tpu.memory_space<vmem>>, vector<1x8x128xf32>
    %cst = arith.constant dense<0.000000e+00> : vector<8x128xf32>
    %1 = vector.multi_reduction <add>, %0, %cst [0] : vector<1x8x128xf32> to vector<8x128xf32>
    %cst_2 = arith.constant dense<0.000000e+00> : vector<128xf32>
    %2 = vector.multi_reduction <add>, %1, %cst_2 [0] : vector<8x128xf32> to vector<128xf32>
    %3 = vector.shape_cast %2 : vector<128xf32> to vector<1x128xf32>
    %c0_3 = arith.constant 0 : index
    %c0_4 = arith.constant 0 : index
    %c0_5 = arith.constant 0 : index
    %4 = vector.load %arg4[%c0_3, %c0_4, %c0_5] : memref<1x8x128xf32, #tpu.memory_space<vmem>>, vector<1x8x128xf32>
    %cst_6 = arith.constant dense<0.000000e+00> : vector<8x128xf32>
    %5 = vector.multi_reduction <add>, %4, %cst_6 [0] : vector<1x8x128xf32> to vector<8x128xf32>
    %cst_7 = arith.constant dense<0.000000e+00> : vector<128xf32>
    %6 = vector.multi_reduction <add>, %5, %cst_7 [0] : vector<8x128xf32> to vector<128xf32>
    %7 = vector.shape_cast %6 : vector<128xf32> to vector<1x128xf32>
    %cst_8 = arith.constant 1.250000e-01 : f32
    %8 = vector.broadcast %cst_8 : f32 to vector<1x128xf32>
    %9 = arith.mulf %3, %8 : vector<1x128xf32>
    %cst_9 = arith.constant 1.250000e-01 : f32
    %10 = vector.broadcast %cst_9 : f32 to vector<1x128xf32>
    %11 = arith.mulf %7, %10 : vector<1x128xf32>
    %12 = arith.mulf %9, %9 : vector<1x128xf32>
    %13 = arith.subf %11, %12 : vector<1x128xf32>
    %cst_10 = arith.constant 0.000000e+00 : f32
    %14 = vector.broadcast %cst_10 : f32 to vector<1x128xf32>
    %15 = arith.maximumf %13, %14 : vector<1x128xf32>
    %c0_11 = arith.constant 0 : index
    %c0_12 = arith.constant 0 : index
    %16 = vector.load %arg5[%c0_11, %c0_12] : memref<1x128xf32, #tpu.memory_space<vmem>>, vector<1x128xf32>
    %cst_13 = arith.constant 9.99999974E-6 : f32
    %17 = vector.broadcast %cst_13 : f32 to vector<1x128xf32>
    %18 = arith.addf %15, %17 : vector<1x128xf32>
    %19 = math.rsqrt %18 : vector<1x128xf32>
    %20 = arith.mulf %16, %19 : vector<1x128xf32>
    %c0_14 = arith.constant 0 : index
    %c0_15 = arith.constant 0 : index
    %21 = vector.load %arg6[%c0_14, %c0_15] : memref<1x128xf32, #tpu.memory_space<vmem>>, vector<1x128xf32>
    %22 = arith.mulf %9, %20 : vector<1x128xf32>
    %23 = arith.subf %21, %22 : vector<1x128xf32>
    %c0_16 = arith.constant 0 : index
    %c0_17 = arith.constant 0 : index
    %24 = vector.load %arg2[%c0_16, %c0_17] : memref<16x128xbf16, #tpu.memory_space<vmem>>, vector<16x128xbf16>
    %25 = arith.extf %24 : vector<16x128xbf16> to vector<16x128xf32>
    %26 = vector.broadcast %20 : vector<1x128xf32> to vector<16x128xf32>
    %27 = arith.mulf %25, %26 : vector<16x128xf32>
    %28 = vector.broadcast %23 : vector<1x128xf32> to vector<16x128xf32>
    %29 = arith.addf %27, %28 : vector<16x128xf32>
    %cst_18 = arith.constant 0.000000e+00 : f32
    %30 = vector.broadcast %cst_18 : f32 to vector<16x128xf32>
    %31 = arith.maximumf %29, %30 : vector<16x128xf32>
    %c0_19 = arith.constant 0 : index
    %c0_20 = arith.constant 0 : index
    %32 = vector.load %arg7[%c0_19, %c0_20] : memref<16x128xbf16, #tpu.memory_space<vmem>>, vector<16x128xbf16>
    %33 = arith.extf %32 : vector<16x128xbf16> to vector<16x128xf32>
    %34 = arith.addf %31, %33 : vector<16x128xf32>
    %c0_21 = arith.constant 0 : index
    %c0_22 = arith.constant 0 : index
    %35 = vector.load %arg8[%c0_21, %c0_22] : memref<16x128xf32, #tpu.memory_space<vmem>>, vector<16x128xf32>
    tpu.vector_store %arg8[%c0_21, %c0_22], %34 {strides = array<i32>} : memref<16x128xf32, #tpu.memory_space<vmem>>, vector<16x128xf32>,
    return
  }
  func.func @transform_0(%arg0: i32, %arg1: i32) -> (i32, i32) {
    %c1_i32 = arith.constant 1 : i32
    %0 = arith.muli %arg0, %c1_i32 : i32
    %1 = arith.addi %0, %arg1 : i32
    %c0_i32 = arith.constant 0 : i32
    %c0_i32_0 = arith.constant 0 : i32
    return %1, %c0_i32 : i32, i32
  }
  func.func @transform_1(%arg0: i32, %arg1: i32) -> (i32, i32, i32) {
    %c0_i32 = arith.constant 0 : i32
    %c0_i32_0 = arith.constant 0 : i32
    %c0_i32_1 = arith.constant 0 : i32
    %c0_i32_2 = arith.constant 0 : i32
    return %c0_i32, %c0_i32_0, %c0_i32_1 : i32, i32, i32
  }
  func.func @transform_2(%arg0: i32, %arg1: i32) -> (i32, i32, i32) {
    %c0_i32 = arith.constant 0 : i32
    %c0_i32_0 = arith.constant 0 : i32
    %c0_i32_1 = arith.constant 0 : i32
    %c0_i32_2 = arith.constant 0 : i32
    return %c0_i32, %c0_i32_0, %c0_i32_1 : i32, i32, i32
  }
  func.func @transform_3(%arg0: i32, %arg1: i32) -> (i32, i32) {
    %c0_i32 = arith.constant 0 : i32
    %c0_i32_0 = arith.constant 0 : i32
    %c0_i32_1 = arith.constant 0 : i32
    return %c0_i32, %c0_i32_0 : i32, i32
  }
  func.func @transform_4(%arg0: i32, %arg1: i32) -> (i32, i32) {
    %c0_i32 = arith.constant 0 : i32
    %c0_i32_0 = arith.constant 0 : i32
    %c0_i32_1 = arith.constant 0 : i32
    return %c0_i32, %c0_i32_0 : i32, i32
  }
  func.func @transform_5(%arg0: i32, %arg1: i32) -> (i32, i32) {
    %c1_i32 = arith.constant 1 : i32
    %0 = arith.muli %arg0, %c1_i32 : i32
    %1 = arith.addi %0, %arg1 : i32
    %c0_i32 = arith.constant 0 : i32
    %c0_i32_0 = arith.constant 0 : i32
    return %1, %c0_i32 : i32, i32
  }
  func.func @transform_6(%arg0: i32, %arg1: i32) -> (i32, i32) {
    %c1_i32 = arith.constant 1 : i32
    %0 = arith.muli %arg0, %c1_i32 : i32
    %1 = arith.addi %0, %arg1 : i32
    %c0_i32 = arith.constant 0 : i32
    %c0_i32_0 = arith.constant 0 : i32
    return %1, %c0_i32 : i32, i32
  }
}

module attributes {stable_mosaic.version = 11 : i64} {
  func.func @_mid_res_kernel(%arg0: i32, %arg1: i32, %arg2: memref<16x128xbf16, #tpu.memory_space<vmem>>, %arg3: memref<1x8x128xf32, #tpu.memory_space<vmem>>, %arg4: memref<1x8x128xf32, #tpu.memory_space<vmem>>, %arg5: memref<1x128xf32, #tpu.memory_space<vmem>>, %arg6: memref<1x128xf32, #tpu.memory_space<vmem>>, %arg7: memref<16x128xbf16, #tpu.memory_space<vmem>>, %arg8: memref<128x128xbf16, #tpu.memory_space<vmem>>, %arg9: memref<16x128xbf16, #tpu.memory_space<vmem>>, %arg10: memref<16x128xbf16, #tpu.memory_space<vmem>>, %arg11: memref<1x8x128xf32, #tpu.memory_space<vmem>>, %arg12: memref<1x8x128xf32, #tpu.memory_space<vmem>>) attributes {dimension_semantics = [#tpu.dimension_semantics<parallel>, #tpu.dimension_semantics<arbitrary>], iteration_bounds = array<i64: 1, 1>, scalar_prefetch = 0 : i64, scratch_operands = 0 : i64, tpu.core_type = #tpu.core_type<tc>, window_params = [{transform_indices = @transform_0, window_bounds = array<i64: 16, 128>}, {pipeline_mode = #tpu.pipeline_mode<synchronous>, transform_indices = @transform_1, window_bounds = array<i64: 1, 8, 128>}, {pipeline_mode = #tpu.pipeline_mode<synchronous>, transform_indices = @transform_2, window_bounds = array<i64: 1, 8, 128>}, {pipeline_mode = #tpu.pipeline_mode<synchronous>, transform_indices = @transform_3, window_bounds = array<i64: 1, 128>}, {pipeline_mode = #tpu.pipeline_mode<synchronous>, transform_indices = @transform_4, window_bounds = array<i64: 1, 128>}, {transform_indices = @transform_5, window_bounds = array<i64: 16, 128>}, {pipeline_mode = #tpu.pipeline_mode<synchronous>, transform_indices = @transform_6, window_bounds = array<i64: 128, 128>}, {transform_indices = @transform_7, window_bounds = array<i64: 16, 128>}, {transform_indices = @transform_8, window_bounds = array<i64: 16, 128>}, {transform_indices = @transform_9, window_bounds = array<i64: 1, 8, 128>}, {transform_indices = @transform_10, window_bounds = array<i64: 1, 8, 128>}]} {
    %c0_i32 = arith.constant 0 : i32
    %0 = arith.cmpi eq, %arg1, %c0_i32 : i32
    %1 = arith.extui %0 : i1 to i32
    %c0_i32_0 = arith.constant 0 : i32
    %2 = arith.cmpi ne, %1, %c0_i32_0 : i32
    scf.if %2 {
      %cst_44 = arith.constant 0.000000e+00 : f32
      %67 = vector.broadcast %cst_44 : f32 to vector<1x8x128xf32>
      %c0_45 = arith.constant 0 : index
      %c0_46 = arith.constant 0 : index
      %c0_47 = arith.constant 0 : index
      %68 = vector.load %arg11[%c0_45, %c0_46, %c0_47] : memref<1x8x128xf32, #tpu.memory_space<vmem>>, vector<1x8x128xf32>
      tpu.vector_store %arg11[%c0_45, %c0_46, %c0_47], %67 {strides = array<i32>} : memref<1x8x128xf32, #tpu.memory_space<vmem>>, vector<1x8x128xf32>,
      %cst_48 = arith.constant 0.000000e+00 : f32
      %69 = vector.broadcast %cst_48 : f32 to vector<1x8x128xf32>
      %c0_49 = arith.constant 0 : index
      %c0_50 = arith.constant 0 : index
      %c0_51 = arith.constant 0 : index
      %70 = vector.load %arg12[%c0_49, %c0_50, %c0_51] : memref<1x8x128xf32, #tpu.memory_space<vmem>>, vector<1x8x128xf32>
      tpu.vector_store %arg12[%c0_49, %c0_50, %c0_51], %69 {strides = array<i32>} : memref<1x8x128xf32, #tpu.memory_space<vmem>>, vector<1x8x128xf32>,
    } else {
    }
    %c0 = arith.constant 0 : index
    %c0_1 = arith.constant 0 : index
    %c0_2 = arith.constant 0 : index
    %3 = vector.load %arg3[%c0, %c0_1, %c0_2] : memref<1x8x128xf32, #tpu.memory_space<vmem>>, vector<1x8x128xf32>
    %cst = arith.constant dense<0.000000e+00> : vector<8x128xf32>
    %4 = vector.multi_reduction <add>, %3, %cst [0] : vector<1x8x128xf32> to vector<8x128xf32>
    %cst_3 = arith.constant dense<0.000000e+00> : vector<128xf32>
    %5 = vector.multi_reduction <add>, %4, %cst_3 [0] : vector<8x128xf32> to vector<128xf32>
    %6 = vector.shape_cast %5 : vector<128xf32> to vector<1x128xf32>
    %c0_4 = arith.constant 0 : index
    %c0_5 = arith.constant 0 : index
    %c0_6 = arith.constant 0 : index
    %7 = vector.load %arg4[%c0_4, %c0_5, %c0_6] : memref<1x8x128xf32, #tpu.memory_space<vmem>>, vector<1x8x128xf32>
    %cst_7 = arith.constant dense<0.000000e+00> : vector<8x128xf32>
    %8 = vector.multi_reduction <add>, %7, %cst_7 [0] : vector<1x8x128xf32> to vector<8x128xf32>
    %cst_8 = arith.constant dense<0.000000e+00> : vector<128xf32>
    %9 = vector.multi_reduction <add>, %8, %cst_8 [0] : vector<8x128xf32> to vector<128xf32>
    %10 = vector.shape_cast %9 : vector<128xf32> to vector<1x128xf32>
    %cst_9 = arith.constant 1.250000e-01 : f32
    %11 = vector.broadcast %cst_9 : f32 to vector<1x128xf32>
    %12 = arith.mulf %6, %11 : vector<1x128xf32>
    %cst_10 = arith.constant 1.250000e-01 : f32
    %13 = vector.broadcast %cst_10 : f32 to vector<1x128xf32>
    %14 = arith.mulf %10, %13 : vector<1x128xf32>
    %15 = arith.mulf %12, %12 : vector<1x128xf32>
    %16 = arith.subf %14, %15 : vector<1x128xf32>
    %cst_11 = arith.constant 0.000000e+00 : f32
    %17 = vector.broadcast %cst_11 : f32 to vector<1x128xf32>
    %18 = arith.maximumf %16, %17 : vector<1x128xf32>
    %c0_12 = arith.constant 0 : index
    %c0_13 = arith.constant 0 : index
    %19 = vector.load %arg5[%c0_12, %c0_13] : memref<1x128xf32, #tpu.memory_space<vmem>>, vector<1x128xf32>
    %cst_14 = arith.constant 9.99999974E-6 : f32
    %20 = vector.broadcast %cst_14 : f32 to vector<1x128xf32>
    %21 = arith.addf %18, %20 : vector<1x128xf32>
    %22 = math.rsqrt %21 : vector<1x128xf32>
    %23 = arith.mulf %19, %22 : vector<1x128xf32>
    %c0_15 = arith.constant 0 : index
    %c0_16 = arith.constant 0 : index
    %24 = vector.load %arg6[%c0_15, %c0_16] : memref<1x128xf32, #tpu.memory_space<vmem>>, vector<1x128xf32>
    %25 = arith.mulf %12, %23 : vector<1x128xf32>
    %26 = arith.subf %24, %25 : vector<1x128xf32>
    %c0_17 = arith.constant 0 : index
    %c0_18 = arith.constant 0 : index
    %27 = vector.load %arg2[%c0_17, %c0_18] : memref<16x128xbf16, #tpu.memory_space<vmem>>, vector<16x128xbf16>
    %28 = arith.extf %27 : vector<16x128xbf16> to vector<16x128xf32>
    %29 = vector.broadcast %23 : vector<1x128xf32> to vector<16x128xf32>
    %30 = arith.mulf %28, %29 : vector<16x128xf32>
    %31 = vector.broadcast %26 : vector<1x128xf32> to vector<16x128xf32>
    %32 = arith.addf %30, %31 : vector<16x128xf32>
    %cst_19 = arith.constant 0.000000e+00 : f32
    %33 = vector.broadcast %cst_19 : f32 to vector<16x128xf32>
    %34 = arith.maximumf %32, %33 : vector<16x128xf32>
    %c1_i32 = arith.constant 1 : i32
    %35 = arith.muli %arg0, %c1_i32 : i32
    %36 = arith.addi %35, %arg1 : i32
    %c16_i32 = arith.constant 16 : i32
    %37 = arith.muli %36, %c16_i32 : i32
    %38 = tpu.iota {dimensions = array<i32: 0>} : vector<16x128xi32>
    %39 = vector.broadcast %37 : i32 to vector<16x128xi32>
    %40 = arith.addi %39, %38 : vector<16x128xi32>
    %c8_i32 = arith.constant 8 : i32
    %41 = vector.broadcast %c8_i32 : i32 to vector<16x128xi32>
    %42 = arith.cmpi slt, %40, %41 : vector<16x128xi32>
    %cst_20 = arith.constant 0.000000e+00 : f32
    %43 = vector.broadcast %cst_20 : f32 to vector<16x128xf32>
    %44 = arith.select %42, %34, %43 : vector<16x128xi1>, vector<16x128xf32>
    %c0_21 = arith.constant 0 : index
    %c0_22 = arith.constant 0 : index
    %45 = vector.load %arg7[%c0_21, %c0_22] : memref<16x128xbf16, #tpu.memory_space<vmem>>, vector<16x128xbf16>
    %46 = arith.extf %45 : vector<16x128xbf16> to vector<16x128xf32>
    %47 = arith.addf %44, %46 : vector<16x128xf32>
    %48 = arith.truncf %47 : vector<16x128xf32> to vector<16x128xbf16>
    %c0_23 = arith.constant 0 : index
    %c0_24 = arith.constant 0 : index
    %49 = vector.load %arg9[%c0_23, %c0_24] : memref<16x128xbf16, #tpu.memory_space<vmem>>, vector<16x128xbf16>
    tpu.vector_store %arg9[%c0_23, %c0_24], %48 {strides = array<i32>} : memref<16x128xbf16, #tpu.memory_space<vmem>>, vector<16x128xbf16>,
    %50 = arith.truncf %47 : vector<16x128xf32> to vector<16x128xbf16>
    %c0_25 = arith.constant 0 : index
    %c0_26 = arith.constant 0 : index
    %51 = vector.load %arg8[%c0_25, %c0_26] : memref<128x128xbf16, #tpu.memory_space<vmem>>, vector<128x128xbf16>
    %cst_27 = arith.constant dense<0.000000e+00> : vector<16x128xf32>
    %52 = tpu.matmul %50, %51, %cst_27 {dimension_numbers = #tpu.dot_dimension_numbers<[1], [0], [0], [1], [0, 0, 1, 1], [], []>} : vector<16x128xbf16>, vector<128x128xbf16>, vector<16x128xf32> -> vector<16x128xf32>
    %53 = arith.truncf %52 : vector<16x128xf32> to vector<16x128xbf16>
    %c0_28 = arith.constant 0 : index
    %c0_29 = arith.constant 0 : index
    %54 = vector.load %arg10[%c0_28, %c0_29] : memref<16x128xbf16, #tpu.memory_space<vmem>>, vector<16x128xbf16>
    tpu.vector_store %arg10[%c0_28, %c0_29], %53 {strides = array<i32>} : memref<16x128xbf16, #tpu.memory_space<vmem>>, vector<16x128xbf16>,
    %55 = vector.shape_cast %52 : vector<16x128xf32> to vector<2x8x128xf32>
    %cst_30 = arith.constant dense<0.000000e+00> : vector<8x128xf32>
    %56 = vector.multi_reduction <add>, %55, %cst_30 [0] : vector<2x8x128xf32> to vector<8x128xf32>
    %57 = arith.mulf %55, %55 : vector<2x8x128xf32>
    %cst_31 = arith.constant dense<0.000000e+00> : vector<8x128xf32>
    %58 = vector.multi_reduction <add>, %57, %cst_31 [0] : vector<2x8x128xf32> to vector<8x128xf32>
    %c0_32 = arith.constant 0 : index
    %c0_33 = arith.constant 0 : index
    %c0_34 = arith.constant 0 : index
    %59 = vector.load %arg11[%c0_32, %c0_33, %c0_34] : memref<1x8x128xf32, #tpu.memory_space<vmem>>, vector<1x8x128xf32>
    %60 = vector.shape_cast %56 : vector<8x128xf32> to vector<1x8x128xf32>
    %61 = arith.addf %59, %60 : vector<1x8x128xf32>
    %c0_35 = arith.constant 0 : index
    %c0_36 = arith.constant 0 : index
    %c0_37 = arith.constant 0 : index
    %62 = vector.load %arg11[%c0_35, %c0_36, %c0_37] : memref<1x8x128xf32, #tpu.memory_space<vmem>>, vector<1x8x128xf32>
    tpu.vector_store %arg11[%c0_35, %c0_36, %c0_37], %61 {strides = array<i32>} : memref<1x8x128xf32, #tpu.memory_space<vmem>>, vector<1x8x128xf32>,
    %c0_38 = arith.constant 0 : index
    %c0_39 = arith.constant 0 : index
    %c0_40 = arith.constant 0 : index
    %63 = vector.load %arg12[%c0_38, %c0_39, %c0_40] : memref<1x8x128xf32, #tpu.memory_space<vmem>>, vector<1x8x128xf32>
    %64 = vector.shape_cast %58 : vector<8x128xf32> to vector<1x8x128xf32>
    %65 = arith.addf %63, %64 : vector<1x8x128xf32>
    %c0_41 = arith.constant 0 : index
    %c0_42 = arith.constant 0 : index
    %c0_43 = arith.constant 0 : index
    %66 = vector.load %arg12[%c0_41, %c0_42, %c0_43] : memref<1x8x128xf32, #tpu.memory_space<vmem>>, vector<1x8x128xf32>
    tpu.vector_store %arg12[%c0_41, %c0_42, %c0_43], %65 {strides = array<i32>} : memref<1x8x128xf32, #tpu.memory_space<vmem>>, vector<1x8x128xf32>,
    return
  }
  func.func @transform_0(%arg0: i32, %arg1: i32) -> (i32, i32) {
    %c1_i32 = arith.constant 1 : i32
    %0 = arith.muli %arg0, %c1_i32 : i32
    %1 = arith.addi %0, %arg1 : i32
    %c0_i32 = arith.constant 0 : i32
    %c0_i32_0 = arith.constant 0 : i32
    return %1, %c0_i32 : i32, i32
  }
  func.func @transform_1(%arg0: i32, %arg1: i32) -> (i32, i32, i32) {
    %c0_i32 = arith.constant 0 : i32
    %c0_i32_0 = arith.constant 0 : i32
    %c0_i32_1 = arith.constant 0 : i32
    %c0_i32_2 = arith.constant 0 : i32
    return %c0_i32, %c0_i32_0, %c0_i32_1 : i32, i32, i32
  }
  func.func @transform_2(%arg0: i32, %arg1: i32) -> (i32, i32, i32) {
    %c0_i32 = arith.constant 0 : i32
    %c0_i32_0 = arith.constant 0 : i32
    %c0_i32_1 = arith.constant 0 : i32
    %c0_i32_2 = arith.constant 0 : i32
    return %c0_i32, %c0_i32_0, %c0_i32_1 : i32, i32, i32
  }
  func.func @transform_3(%arg0: i32, %arg1: i32) -> (i32, i32) {
    %c0_i32 = arith.constant 0 : i32
    %c0_i32_0 = arith.constant 0 : i32
    %c0_i32_1 = arith.constant 0 : i32
    return %c0_i32, %c0_i32_0 : i32, i32
  }
  func.func @transform_4(%arg0: i32, %arg1: i32) -> (i32, i32) {
    %c0_i32 = arith.constant 0 : i32
    %c0_i32_0 = arith.constant 0 : i32
    %c0_i32_1 = arith.constant 0 : i32
    return %c0_i32, %c0_i32_0 : i32, i32
  }
  func.func @transform_5(%arg0: i32, %arg1: i32) -> (i32, i32) {
    %c1_i32 = arith.constant 1 : i32
    %0 = arith.muli %arg0, %c1_i32 : i32
    %1 = arith.addi %0, %arg1 : i32
    %c0_i32 = arith.constant 0 : i32
    %c0_i32_0 = arith.constant 0 : i32
    return %1, %c0_i32 : i32, i32
  }
  func.func @transform_6(%arg0: i32, %arg1: i32) -> (i32, i32) {
    %c0_i32 = arith.constant 0 : i32
    %c0_i32_0 = arith.constant 0 : i32
    %c0_i32_1 = arith.constant 0 : i32
    return %c0_i32, %c0_i32_0 : i32, i32
  }
  func.func @transform_7(%arg0: i32, %arg1: i32) -> (i32, i32) {
    %c1_i32 = arith.constant 1 : i32
    %0 = arith.muli %arg0, %c1_i32 : i32
    %1 = arith.addi %0, %arg1 : i32
    %c0_i32 = arith.constant 0 : i32
    %c0_i32_0 = arith.constant 0 : i32
    return %1, %c0_i32 : i32, i32
  }
  func.func @transform_8(%arg0: i32, %arg1: i32) -> (i32, i32) {
    %c1_i32 = arith.constant 1 : i32
    %0 = arith.muli %arg0, %c1_i32 : i32
    %1 = arith.addi %0, %arg1 : i32
    %c0_i32 = arith.constant 0 : i32
    %c0_i32_0 = arith.constant 0 : i32
    return %1, %c0_i32 : i32, i32
  }
  func.func @transform_9(%arg0: i32, %arg1: i32) -> (i32, i32, i32) {
    %c0_i32 = arith.constant 0 : i32
    %c0_i32_0 = arith.constant 0 : i32
    %c0_i32_1 = arith.constant 0 : i32
    return %arg0, %c0_i32, %c0_i32_0 : i32, i32, i32
  }
  func.func @transform_10(%arg0: i32, %arg1: i32) -> (i32, i32, i32) {
    %c0_i32 = arith.constant 0 : i32
    %c0_i32_0 = arith.constant 0 : i32
    %c0_i32_1 = arith.constant 0 : i32
    return %arg0, %c0_i32, %c0_i32_0 : i32, i32, i32
  }
}

</mosaic_0001>

<bundles_post_ra>
// kernel: narrow_residual_transformation_head.5
= control target key start
LH: loop header
LB: loop body
LE: loop exit
PB: predicated region body
PF: predicated region fallthrough
CT: control target
= control target key end

     0   :  { %s524_s1 = inlined_call_operand.vmem [shape: bf16[128,256], index: 1, kind: input, shape index: {}]   ;;  %s525_s0 = inlined_call_operand.vmem [shape: bf16[16,128], index: 0, kind: input, shape index: {}]   ;;  %s526_s2 = inlined_call_operand.vmem [shape: bf16[16,128], index: 2, kind: output, shape index: {0}]   ;;  %s527_s3 = inlined_call_operand.vmem [shape: bf16[16,128], index: 3, kind: output, shape index: {1}]   ;;  %s528_s4 = inlined_call_operand.vmem [shape: f32[1,8,128], index: 4, kind: output, shape index: {2}]   ;;  %s529_s5 = inlined_call_operand.vmem [shape: f32[1,8,128], index: 5, kind: output, shape index: {3}]  }
   0x1   :  { %v349_v0 = vld [vmem:[%s524_s1 + $0x70] sm:$0xf]  ;;  %v371_v1 = vld [vmem:[%s524_s1 + $0x74] sm:$0xf0]  ;;  %v370_v2 = vld [vmem:[%s524_s1 + $0x74] sm:$0xf] }
   0x2   :  { %v350_v3 = vor.u32 %v371_v1, %v349_v0  ;;  %v351_v4 = vld [vmem:[%s524_s1 + $0x78] sm:$0xf0]  ;;  %v341_v5 = vld [vmem:[%s524_s1 + $0x60] sm:$0xf]  ;;  %v369_v6 = vld [vmem:[%s524_s1 + $0x64] sm:$0xf0] }
   0x3   :  { %v354_v7 = vor.u32 %v370_v2, %v351_v4  ;;  %v368_v8 = vld [vmem:[%s524_s1 + $0x64] sm:$0xf]  ;;  %v343_v9 = vld [vmem:[%s524_s1 + $0x68] sm:$0xf0]  ;;  %v342_v10 = vor.u32 %v369_v6, %v341_v5  ;;  %v333_v12 = vld [vmem:[%s524_s1 + $0x50] sm:$0xf] }
   0x4   :  { %175 = vmatpush.bf16.msra.mxu0 %v350_v3  ;;  %v346_v11 = vor.u32 %v368_v8, %v343_v9  ;;  %v367_v13 = vld [vmem:[%s524_s1 + $0x54] sm:$0xf0]  ;;  %v366_v14 = vld [vmem:[%s524_s1 + $0x54] sm:$0xf]  ;;  %v335_v15 = vld [vmem:[%s524_s1 + $0x58] sm:$0xf0] }
   0x5   :  { %189 = vmatpush.bf16.msra.mxu1 %v354_v7  ;;  %v334_v16 = vor.u32 %v367_v13, %v333_v12  ;;  %v338_v17 = vor.u32 %v366_v14, %v335_v15  ;;  %v325_v18 = vld [vmem:[%s524_s1 + $0x40] sm:$0xf]  ;;  %v365_v19 = vld [vmem:[%s524_s1 + $0x44] sm:$0xf0]  ;;  %v364_v20 = vld [vmem:[%s524_s1 + $0x44] sm:$0xf] }
   0x6   :  { %v327_v21 = vld [vmem:[%s524_s1 + $0x48] sm:$0xf0]  ;;  %v326_v22 = vor.u32 %v365_v19, %v325_v18  ;;  %v317_v24 = vld [vmem:[%s524_s1 + $0x30] sm:$0xf]  ;;  %v363_v25 = vld [vmem:[%s524_s1 + $0x34] sm:$0xf0] }
   0x7   :  { %v330_v23 = vor.u32 %v364_v20, %v327_v21  ;;  %v362_v26 = vld [vmem:[%s524_s1 + $0x34] sm:$0xf]  ;;  %v319_v27 = vld [vmem:[%s524_s1 + $0x38] sm:$0xf0]  ;;  %v318_v28 = vor.u32 %v363_v25, %v317_v24  ;;  %v309_v30 = vld [vmem:[%s524_s1 + $0x20] sm:$0xf] }
   0x8   :  { %176 = vmatpush.bf16.msra.mxu0 %v342_v10  ;;  %v322_v29 = vor.u32 %v362_v26, %v319_v27  ;;  %v361_v31 = vld [vmem:[%s524_s1 + $0x24] sm:$0xf0]  ;;  %v360_v32 = vld [vmem:[%s524_s1 + $0x24] sm:$0xf]  ;;  %v311_v33 = vld [vmem:[%s524_s1 + $0x28] sm:$0xf0] }
   0x9   :  { %190 = vmatpush.bf16.msra.mxu1 %v346_v11  ;;  %v310_v34 = vor.u32 %v361_v31, %v309_v30  ;;  %v314_v35 = vor.u32 %v360_v32, %v311_v33  ;;  %v301_v36 = vld [vmem:[%s524_s1 + $0x10] sm:$0xf]  ;;  %v359_v37 = vld [vmem:[%s524_s1 + $0x14] sm:$0xf0]  ;;  %v358_v38 = vld [vmem:[%s524_s1 + $0x14] sm:$0xf] }
   0xa   :  { %v303_v39 = vld [vmem:[%s524_s1 + $0x18] sm:$0xf0]  ;;  %v302_v40 = vor.u32 %v359_v37, %v301_v36  ;;  %v293_v42 = vld [vmem:[%s524_s1] sm:$0xf]  ;;  %v357_v43 = vld [vmem:[%s524_s1 + $0x4] sm:$0xf0] }
   0xb   :  { %v306_v41 = vor.u32 %v358_v38, %v303_v39  ;;  %v356_v44 = vld [vmem:[%s524_s1 + $0x4] sm:$0xf]  ;;  %v295_v45 = vld [vmem:[%s524_s1 + $0x8] sm:$0xf0]  ;;  %v294_v46 = vor.u32 %v357_v43, %v293_v42 }
   0xc   :  { %177 = vmatpush.bf16.msra.mxu0 %v334_v16  ;;  %v298_v47 = vor.u32 %v356_v44, %v295_v45  ;;  %v355_v48 = vld [vmem:[%s525_s0] sm:$0xff] }
   0xd   :  { %191 = vmatpush.bf16.msra.mxu1 %v338_v17 }
  0x10   :  { %178 = vmatpush.bf16.msra.mxu0 %v326_v22 }
  0x11   :  { %192 = vmatpush.bf16.msra.mxu1 %v330_v23 }
  0x14   :  { %179 = vmatpush.bf16.msra.mxu0 %v318_v28 }
  0x15   :  { %193 = vmatpush.bf16.msra.mxu1 %v322_v29 }
  0x18   :  { %180 = vmatpush.bf16.msra.mxu0 %v310_v34 }
  0x19   :  { %194 = vmatpush.bf16.msra.mxu1 %v314_v35 }
  0x1c   :  { %181 = vmatpush.bf16.msra.mxu0 %v302_v40 }
  0x1d   :  { %195 = vmatpush.bf16.msra.mxu1 %v306_v41 }
  0x20   :  { %182 = vmatpush.bf16.msra.mxu0 %v294_v46 }
  0x21   :  { %196 = vmatpush.bf16.msra.mxu1 %v298_v47 }
  0x23   :  { %183 = vmatmul.bf16.vlgmr.msra.gmra.mxu0 %v355_v48 }
  0x24   :  { %197 = vmatmul.bf16.vlgmr.msra.gmra.mxu1 %v355_v48 }
  0xa0   :  { %v184_v49 = vpop.f32.mrf.mxu0 }
  0xa1   :  { %v198_v50 = vpop.f32.mrf.mxu1  ;;  %v212_v52 = vmul.f32 %v184_v49, %v184_v49 }
  0xa8   :  { %v186_v51 = vpop.f32.mrf.mxu0 }
  0xa9   :  { %v380_v53 = vpack.c.bf16 %v186_v51, %v184_v49  ;;  %v211_v54 = vadd.f32 %v186_v51, %v184_v49  ;;  %v213_v55 = vmul.f32 %v186_v51, %v186_v51  ;;  %v200_v56 = vpop.f32.mrf.mxu1 }
  0xaa   :  { %v375_v57 = vpack.c.bf16 %v200_v56, %v198_v50 }
  0xab   :  { %381 = vst [vmem:[%s526_s2] sm:$0xff] %v380_v53   ;;  %v214_v58 = vadd.f32 %v213_v55, %v212_v52 }
  0xac   :  { %376 = vst [vmem:[%s527_s3] sm:$0xff] %v375_v57  }
  0xad   :  { %217 = vst [vmem:[%s528_s4] sm:$0xff] %v211_v54 }
  0xae   :  { %220 = vst [vmem:[%s529_s5] sm:$0xff] %v214_v58 }

// kernel: narrow_residual_transformation_head.9
= control target key start
LH: loop header
LB: loop body
LE: loop exit
PB: predicated region body
PF: predicated region fallthrough
CT: control target
= control target key end

     0   :  { %s249_s1 = inlined_call_operand.vmem [shape: f32[1,8,128], index: 1, kind: input, shape index: {}]   ;;  %s250_s2 = inlined_call_operand.vmem [shape: f32[1,8,128], index: 2, kind: input, shape index: {}]   ;;  %s251_s0 = inlined_call_operand.vmem [shape: bf16[16,128], index: 0, kind: input, shape index: {}]   ;;  %s252_s3 = inlined_call_operand.vmem [shape: f32[1,128], index: 3, kind: input, shape index: {}]   ;;  %s253_s4 = inlined_call_operand.vmem [shape: f32[1,128], index: 4, kind: input, shape index: {}]   ;;  %s254_s5 = inlined_call_operand.vmem [shape: bf16[16,128], index: 5, kind: input, shape index: {}]   ;;  %s255_s6 = inlined_call_operand.vmem [shape: f32[16,128], index: 6, kind: output, shape index: {}]  }
   0x1   :  { %v81_v0 = vld [vmem:[%s249_s1] sm:$0xff] }
   0x2   :  { %v89_v1 = vld [vmem:[%s250_s2] sm:$0xff]  ;;  %v83_v2 = vrot.slane %v81_v0, 4 }
   0x3   :  { %v91_v3 = vrot.slane %v89_v1, 4  ;;  %v102_v25 = vld [vmem:[%s252_s3] sm:$0x1] }
   0x4   :  { %v84_v4 = vadd.f32 %v83_v2, %v81_v0  ;;  %v181_v27 = vld [vmem:[%s251_s0] sm:$0xff]  }
   0x5   :  { %v92_v5 = vadd.f32 %v91_v3, %v89_v1  ;;  %v182_v30 = vunpack.c.l.bf16 %v181_v27  ;;  %v183_v31 = vunpack.c.h.bf16 %v181_v27  ;;  %v115_v32 = vld [vmem:[%s253_s4] sm:$0x1] }
   0x6   :  { %v85_v6 = vrot.slane %v84_v4, 2  ;;  %v185_v38 = vld [vmem:[%s254_s5] sm:$0xff]  }
   0x7   :  { %v93_v7 = vrot.slane %v92_v5, 2  ;;  %v186_v41 = vunpack.c.l.bf16 %v185_v38  ;;  %v187_v43 = vunpack.c.h.bf16 %v185_v38 }
   0x8   :  { %v86_v8 = vadd.f32 %v85_v6, %v84_v4 }
   0x9   :  { %v94_v9 = vadd.f32 %v93_v7, %v92_v5 }
   0xa   :  { %v87_v10 = vrot.slane %v86_v8, 1 }
   0xb   :  { %v95_v11 = vrot.slane %v94_v9, 1 }
   0xc   :  { %v88_v12 = vadd.f32 %v87_v10, %v86_v8 }
   0xd   :  { %v96_v13 = vadd.f32 %v95_v11, %v94_v9 }
   0xe   :  { %v97_v14 = vmul.f32 0.125, %v88_v12 }
   0xf   :  { %v98_v15 = vmul.f32 0.125, %v96_v13 }
  0x10   :  { %v99_v16 = vmul.f32 %v97_v14, %v97_v14 }
  0x12   :  { %v100_v17 = vsub.f32 %v98_v15, %v99_v16 }
  0x14   :  { %v101_v18 = vmax.f32 %v100_v17, 0.0 }
  0x16   :  { %v103_v19 = vadd.f32 1e-05, %v101_v18 }
  0x18   :  { %188 = vrsqrt.f32 %v103_v19  ;;  %vm110_vm0 = vweird.f32 %v103_v19 }
  0x1e   :  { %v189_v20 = vpop.eup %188 }
  0x1f   :  { %v105_v21 = vmul.f32 %v189_v20, %v103_v19  ;;  %vm111_vm1 = vweird.f32 %v189_v20 }
  0x20   :  { %vm112_vm2 = vmor %vm110_vm0, %vm111_vm1 }
  0x21   :  { %v106_v22 = vmul.f32 %v189_v20, %v105_v21 }
  0x23   :  { %v107_v23 = vmul.f32 0.5, %v106_v22 }
  0x25   :  { %v108_v24 = vsub.f32 1.5, %v107_v23 }
  0x27   :  { %v109_v26 = vmul.f32 %v189_v20, %v108_v24 }
  0x29   :  { %v113_v28 = vsel %vm112_vm2, %v189_v20, %v109_v26 }
  0x2a   :  { %v114_v29 = vmul.f32 %v113_v28, %v102_v25 }
  0x2c   :  { %v116_v33 = vmul.f32 %v114_v29, %v97_v14  ;;  %v123_v34 = vperm.slane %v114_v29, 0 }
  0x2e   :  { %v117_v35 = vsub.f32 %v115_v32, %v116_v33  ;;  %v125_v36 = vmul.f32 %v182_v30, %v123_v34  ;;  %v126_v37 = vmul.f32 %v183_v31, %v123_v34 }
  0x30   :  { %v128_v39 = vperm.slane %v117_v35, 0 }
  0x32   :  { %v130_v40 = vadd.f32 %v128_v39, %v125_v36  ;;  %v131_v42 = vadd.f32 %v128_v39, %v126_v37 }
  0x34   :  { %v132_v44 = vmax.f32 %v130_v40, 0.0  ;;  %v133_v45 = vmax.f32 %v131_v42, 0.0 }
  0x36   :  { %v138_v46 = vadd.f32 %v186_v41, %v132_v44  ;;  %v139_v47 = vadd.f32 %v187_v43, %v133_v45 }
  0x38   :  { %140 = vst [vmem:[%s255_s6] sm:$0xff] %v138_v46 }
  0x39   :  { %141 = vst [vmem:[%s255_s6 + $0x8] sm:$0xff] %v139_v47 }

// kernel: narrow_residual_transformation_head.7
= control target key start
LH: loop header
LB: loop body
LE: loop exit
PB: predicated region body
PF: predicated region fallthrough
CT: control target
= control target key end

     0   :  { %s518_s6 = inlined_call_operand.vmem [shape: bf16[128,128], index: 6, kind: input, shape index: {}]   ;;  %s519_s1 = inlined_call_operand.vmem [shape: f32[1,8,128], index: 1, kind: input, shape index: {}]   ;;  %s520_s2 = inlined_call_operand.vmem [shape: f32[1,8,128], index: 2, kind: input, shape index: {}]   ;;  %s521_s0 = inlined_call_operand.vmem [shape: bf16[16,128], index: 0, kind: input, shape index: {}]   ;;  %s522_s3 = inlined_call_operand.vmem [shape: f32[1,128], index: 3, kind: input, shape index: {}]   ;;  %s523_s4 = inlined_call_operand.vmem [shape: f32[1,128], index: 4, kind: input, shape index: {}]   ;;  %s524_s5 = inlined_call_operand.vmem [shape: bf16[16,128], index: 5, kind: input, shape index: {}]   ;;  %s525_s7 = inlined_call_operand.vmem [shape: bf16[16,128], index: 7, kind: output, shape index: {0}]   ;;  %s526_s8 = inlined_call_operand.vmem [shape: bf16[16,128], index: 8, kind: output, shape index: {1}]   ;;  %s527_s9 = inlined_call_operand.vmem [shape: f32[1,8,128], index: 9, kind: output, shape index: {2}]   ;;  %s528_s10 = inlined_call_operand.vmem [shape: f32[1,8,128], index: 10, kind: output, shape index: {3}]  }
   0x1   :  { %v392_v0 = vld [vmem:[%s518_s6 + $0x38] sm:$0xff]  ;;  %v391_v1 = vld [vmem:[%s518_s6 + $0x30] sm:$0xff]  ;;  %v108_v2 = vld [vmem:[%s519_s1] sm:$0xff] }
   0x2   :  { %253 = vmatpush.bf16.msra.mxu0 %v392_v0  ;;  %v110_v3 = vrot.slane %v108_v2, 4  ;;  %v116_v4 = vld [vmem:[%s520_s2] sm:$0xff]  ;;  %v390_v7 = vld [vmem:[%s518_s6 + $0x28] sm:$0xff]  ;;  %v388_v17 = vld [vmem:[%s518_s6 + $0x18] sm:$0xff] }
   0x3   :  { %v118_v5 = vrot.slane %v116_v4, 4  ;;  %v389_v12 = vld [vmem:[%s518_s6 + $0x20] sm:$0xff]  ;;  %v387_v22 = vld [vmem:[%s518_s6 + $0x10] sm:$0xff]  ;;  %v386_v25 = vld [vmem:[%s518_s6 + $0x8] sm:$0xff] }
   0x4   :  { %v111_v6 = vadd.f32 %v110_v3, %v108_v2  ;;  %v385_v27 = vld [vmem:[%s518_s6] sm:$0xff] }
   0x5   :  { %v119_v8 = vadd.f32 %v118_v5, %v116_v4  ;;  %v129_v33 = vld [vmem:[%s522_s3] sm:$0x1] }
   0x6   :  { %254 = vmatpush.bf16.msra.mxu0 %v391_v1  ;;  %v112_v9 = vrot.slane %v111_v6, 2  ;;  %v145_v35 = vld [vmem:[%s521_s0] sm:$0xf] }
   0x7   :  { %v120_v10 = vrot.slane %v119_v8, 2  ;;  %v147_v38 = vunpack.c.l.bf16 %v145_v35  ;;  %v142_v39 = vld [vmem:[%s523_s4] sm:$0x1] }
   0x8   :  { %v113_v11 = vadd.f32 %v112_v9, %v111_v6  ;;  %v394_v44 = vld [vmem:[%s524_s5] sm:$0xff]  }
   0x9   :  { %v121_v13 = vadd.f32 %v120_v10, %v119_v8  ;;  %v396_v46 = vunpack.c.h.bf16 %v394_v44  ;;  %v395_v48 = vunpack.c.l.bf16 %v394_v44 }
   0xa   :  { %255 = vmatpush.bf16.msra.mxu0 %v390_v7  ;;  %v114_v14 = vrot.slane %v113_v11, 1 }
   0xb   :  { %v122_v15 = vrot.slane %v121_v13, 1  ;;  %v180_v50 = vpack.c.bf16 %v396_v46, %v396_v46 }
   0xc   :  { %v115_v16 = vadd.f32 %v114_v14, %v113_v11 }
   0xd   :  { %v123_v18 = vadd.f32 %v122_v15, %v121_v13  ;;  %v202_v54 = vunpack.c.l.b16 %v180_v50 }
   0xe   :  { %256 = vmatpush.bf16.msra.mxu0 %v389_v12  ;;  %v124_v19 = vmul.f32 0.125, %v115_v16 }
   0xf   :  { %v125_v20 = vmul.f32 0.125, %v123_v18 }
  0x10   :  { %v126_v21 = vmul.f32 %v124_v19, %v124_v19 }
  0x12   :  { %257 = vmatpush.bf16.msra.mxu0 %v388_v17  ;;  %v127_v23 = vsub.f32 %v125_v20, %v126_v21 }
  0x14   :  { %v128_v24 = vmax.f32 %v127_v23, 0.0 }
  0x16   :  { %258 = vmatpush.bf16.msra.mxu0 %v387_v22  ;;  %v130_v26 = vadd.f32 1e-05, %v128_v24 }
  0x18   :  { %407 = vrsqrt.f32 %v130_v26  ;;  %vm137_vm0 = vweird.f32 %v130_v26 }
  0x1a   :  { %259 = vmatpush.bf16.msra.mxu0 %v386_v25 }
  0x1e   :  { %260 = vmatpush.bf16.msra.mxu0 %v385_v27  ;;  %v408_v28 = vpop.eup %407 }
  0x1f   :  { %v132_v29 = vmul.f32 %v408_v28, %v130_v26  ;;  %vm138_vm1 = vweird.f32 %v408_v28 }
  0x20   :  { %vm139_vm2 = vmor %vm137_vm0, %vm138_vm1 }
  0x21   :  { %v133_v30 = vmul.f32 %v408_v28, %v132_v29 }
  0x23   :  { %v134_v31 = vmul.f32 0.5, %v133_v30 }
  0x25   :  { %v135_v32 = vsub.f32 1.5, %v134_v31 }
  0x27   :  { %v136_v34 = vmul.f32 %v408_v28, %v135_v32 }
  0x29   :  { %v140_v36 = vsel %vm139_vm2, %v408_v28, %v136_v34 }
  0x2a   :  { %v141_v37 = vmul.f32 %v140_v36, %v129_v33 }
  0x2c   :  { %v143_v40 = vmul.f32 %v141_v37, %v124_v19  ;;  %v150_v41 = vperm.slane %v141_v37, 0 }
  0x2e   :  { %v144_v42 = vsub.f32 %v142_v39, %v143_v40  ;;  %v152_v43 = vmul.f32 %v150_v41, %v147_v38 }
  0x30   :  { %v155_v45 = vperm.slane %v144_v42, 0 }
  0x32   :  { %v157_v47 = vadd.f32 %v155_v45, %v152_v43 }
  0x34   :  { %v159_v49 = vmax.f32 %v157_v47, 0.0 }
  0x36   :  { %v177_v51 = vadd.f32 %v395_v48, %v159_v49 }
  0x38   :  { %v179_v52 = vpack.c.bf16 %v177_v51, %v177_v51  ;;  %v399_v53 = vpack.c.bf16 %v396_v46, %v177_v51 }
  0x3a   :  { %400 = vst [vmem:[%s525_s7] sm:$0xff] %v399_v53   ;;  %v201_v55 = vunpack.c.l.b16 %v179_v52 }
  0x3c   :  { %v203_v56 = vpack.c.b16 %v202_v54, %v201_v55 }
  0x3e   :  { %261 = vmatmul.bf16.vlgmr.msra.gmra.mxu0 %v203_v56 }
  0xbb   :  { %v262_v57 = vpop.f32.mrf.mxu0 }
  0xbc   :  { %v272_v59 = vmul.f32 %v262_v57, %v262_v57 }
  0xc3   :  { %v264_v58 = vpop.f32.mrf.mxu0 }
  0xc4   :  { %v404_v60 = vpack.c.bf16 %v264_v58, %v262_v57  ;;  %v271_v61 = vadd.f32 %v264_v58, %v262_v57  ;;  %v273_v62 = vmul.f32 %v264_v58, %v264_v58 }
  0xc6   :  { %405 = vst [vmem:[%s526_s8] sm:$0xff] %v404_v60   ;;  %v274_v63 = vadd.f32 %v273_v62, %v272_v59 }
  0xc7   :  { %277 = vst [vmem:[%s527_s9] sm:$0xff] %v271_v61 }
  0xc8   :  { %280 = vst [vmem:[%s528_s10] sm:$0xff] %v274_v63 }

// kernel: narrow_residual_transformation_head.6
= control target key start
LH: loop header
LB: loop body
LE: loop exit
PB: predicated region body
PF: predicated region fallthrough
CT: control target
= control target key end

     0   :  { %s407_s5 = inlined_call_operand.vmem [shape: bf16[128,128], index: 5, kind: input, shape index: {}]   ;;  %s408_s1 = inlined_call_operand.vmem [shape: f32[1,8,128], index: 1, kind: input, shape index: {}]   ;;  %s409_s2 = inlined_call_operand.vmem [shape: f32[1,8,128], index: 2, kind: input, shape index: {}]   ;;  %s410_s0 = inlined_call_operand.vmem [shape: bf16[16,128], index: 0, kind: input, shape index: {}]   ;;  %s411_s3 = inlined_call_operand.vmem [shape: f32[1,128], index: 3, kind: input, shape index: {}]   ;;  %s412_s4 = inlined_call_operand.vmem [shape: f32[1,128], index: 4, kind: input, shape index: {}]   ;;  %s413_s6 = inlined_call_operand.vmem [shape: bf16[16,128], index: 6, kind: output, shape index: {0}]   ;;  %s414_s7 = inlined_call_operand.vmem [shape: f32[1,8,128], index: 7, kind: output, shape index: {1}]   ;;  %s415_s8 = inlined_call_operand.vmem [shape: f32[1,8,128], index: 8, kind: output, shape index: {2}]  }
   0x1   :  { %v305_v0 = vld [vmem:[%s407_s5 + $0x38] sm:$0xff]  ;;  %v304_v1 = vld [vmem:[%s407_s5 + $0x30] sm:$0xff]  ;;  %v68_v2 = vld [vmem:[%s408_s1] sm:$0xff] }
   0x2   :  { %198 = vmatpush.bf16.msra.mxu0 %v305_v0  ;;  %v70_v3 = vrot.slane %v68_v2, 4  ;;  %v76_v4 = vld [vmem:[%s409_s2] sm:$0xff]  ;;  %v303_v7 = vld [vmem:[%s407_s5 + $0x28] sm:$0xff]  ;;  %v301_v17 = vld [vmem:[%s407_s5 + $0x18] sm:$0xff] }
   0x3   :  { %v78_v5 = vrot.slane %v76_v4, 4  ;;  %v302_v12 = vld [vmem:[%s407_s5 + $0x20] sm:$0xff]  ;;  %v300_v22 = vld [vmem:[%s407_s5 + $0x10] sm:$0xff]  ;;  %v299_v25 = vld [vmem:[%s407_s5 + $0x8] sm:$0xff] }
   0x4   :  { %v71_v6 = vadd.f32 %v70_v3, %v68_v2  ;;  %v298_v27 = vld [vmem:[%s407_s5] sm:$0xff] }
   0x5   :  { %v79_v8 = vadd.f32 %v78_v5, %v76_v4  ;;  %v89_v33 = vld [vmem:[%s411_s3] sm:$0x1] }
   0x6   :  { %199 = vmatpush.bf16.msra.mxu0 %v304_v1  ;;  %v72_v9 = vrot.slane %v71_v6, 2  ;;  %v105_v35 = vld [vmem:[%s410_s0] sm:$0xf] }
   0x7   :  { %v80_v10 = vrot.slane %v79_v8, 2  ;;  %v107_v38 = vunpack.c.l.bf16 %v105_v35  ;;  %v102_v39 = vld [vmem:[%s412_s4] sm:$0x1] }
   0x8   :  { %v73_v11 = vadd.f32 %v72_v9, %v71_v6 }
   0x9   :  { %v81_v13 = vadd.f32 %v80_v10, %v79_v8 }
   0xa   :  { %200 = vmatpush.bf16.msra.mxu0 %v303_v7  ;;  %v74_v14 = vrot.slane %v73_v11, 1 }
   0xb   :  { %v82_v15 = vrot.slane %v81_v13, 1 }
   0xc   :  { %v75_v16 = vadd.f32 %v74_v14, %v73_v11 }
   0xd   :  { %v83_v18 = vadd.f32 %v82_v15, %v81_v13 }
   0xe   :  { %201 = vmatpush.bf16.msra.mxu0 %v302_v12  ;;  %v84_v19 = vmul.f32 0.125, %v75_v16 }
   0xf   :  { %v85_v20 = vmul.f32 0.125, %v83_v18 }
  0x10   :  { %v86_v21 = vmul.f32 %v84_v19, %v84_v19 }
  0x12   :  { %202 = vmatpush.bf16.msra.mxu0 %v301_v17  ;;  %v87_v23 = vsub.f32 %v85_v20, %v86_v21 }
  0x14   :  { %v88_v24 = vmax.f32 %v87_v23, 0.0 }
  0x16   :  { %203 = vmatpush.bf16.msra.mxu0 %v300_v22  ;;  %v90_v26 = vadd.f32 1e-05, %v88_v24 }
  0x18   :  { %312 = vrsqrt.f32 %v90_v26  ;;  %vm97_vm0 = vweird.f32 %v90_v26 }
  0x1a   :  { %204 = vmatpush.bf16.msra.mxu0 %v299_v25 }
  0x1e   :  { %205 = vmatpush.bf16.msra.mxu0 %v298_v27  ;;  %v313_v28 = vpop.eup %312 }
  0x1f   :  { %v92_v29 = vmul.f32 %v313_v28, %v90_v26  ;;  %vm98_vm1 = vweird.f32 %v313_v28 }
  0x20   :  { %vm99_vm2 = vmor %vm97_vm0, %vm98_vm1 }
  0x21   :  { %v93_v30 = vmul.f32 %v313_v28, %v92_v29 }
  0x23   :  { %v94_v31 = vmul.f32 0.5, %v93_v30 }
  0x25   :  { %v95_v32 = vsub.f32 1.5, %v94_v31 }
  0x27   :  { %v96_v34 = vmul.f32 %v313_v28, %v95_v32 }
  0x29   :  { %v100_v36 = vsel %vm99_vm2, %v313_v28, %v96_v34 }
  0x2a   :  { %v101_v37 = vmul.f32 %v100_v36, %v89_v33 }
  0x2c   :  { %v103_v40 = vmul.f32 %v101_v37, %v84_v19  ;;  %v110_v41 = vperm.slane %v101_v37, 0 }
  0x2e   :  { %v104_v42 = vsub.f32 %v102_v39, %v103_v40  ;;  %v112_v43 = vmul.f32 %v110_v41, %v107_v38 }
  0x30   :  { %v115_v44 = vperm.slane %v104_v42, 0 }
  0x32   :  { %v117_v45 = vadd.f32 %v115_v44, %v112_v43 }
  0x34   :  { %v119_v46 = vmax.f32 %v117_v45, 0.0 }
  0x36   :  { %v133_v47 = vpack.c.bf16 0.0, %v119_v46 }
  0x38   :  { %206 = vmatmul.bf16.vlgmr.msra.gmra.mxu0 %v133_v47 }
  0xb5   :  { %v207_v48 = vpop.f32.mrf.mxu0 }
  0xb6   :  { %v217_v50 = vmul.f32 %v207_v48, %v207_v48 }
  0xbd   :  { %v209_v49 = vpop.f32.mrf.mxu0 }
  0xbe   :  { %v309_v51 = vpack.c.bf16 %v209_v49, %v207_v48  ;;  %v216_v52 = vadd.f32 %v209_v49, %v207_v48  ;;  %v218_v53 = vmul.f32 %v209_v49, %v209_v49 }
  0xc0   :  { %310 = vst [vmem:[%s413_s6] sm:$0xff] %v309_v51   ;;  %v219_v54 = vadd.f32 %v218_v53, %v217_v50 }
  0xc1   :  { %222 = vst [vmem:[%s414_s7] sm:$0xff] %v216_v52 }
  0xc2   :  { %225 = vst [vmem:[%s415_s8] sm:$0xff] %v219_v54 }

</bundles_post_ra>
